<compile_context>
chip_gen: v6e
topology: v6e:2x2x1
jax: 0.10.0
libtpu: 0.0.40
codegen_flags: <defaults>
</compile_context>

<pallas_src>
import functools
import math

import jax
import jax.numpy as jnp
from jax.experimental import pallas as pl
from jax.experimental.pallas import tpu as pltpu  # noqa: F401  (kept for compiler params if tiled later)


# ----------------------------------------------------------------------------
# Kernel 1: conv1 as a batched GEMM, feature-major (lane dim = B*Ho*Wo).
#   h1^T = relu(W1 (16,9) @ patches1^T (9, B*196) + b1)
# ----------------------------------------------------------------------------
def _conv1_kernel(p1t_ref, w1_ref, b1_ref, o_ref):
    o_ref[...] = jnp.maximum(
        jnp.dot(w1_ref[...], p1t_ref[...], preferred_element_type=jnp.float32)
        + b1_ref[...], 0.0)


# ----------------------------------------------------------------------------
# Kernel 2: fused conv2 + ScouterAttention + Aggregate + reconstruction heads.
# Whole batch in one step; every matmul is a batched GEMM.
# Layouts: features (D, B*N), attention (C, B*N), heads (B, ...).
# ----------------------------------------------------------------------------
def _fused_kernel(p2t_ref, pet_ref, segt_ref,
                  w2m_ref, b2_ref, wk_ref, bk_ref, slots_ref,
                  wa1_ref, ba1_ref, wa2_ref, ba2_ref,
                  wf1_ref, bf1_ref, wf2_ref, bf2_ref,
                  slab_ref, attn_ref, upd_ref,
                  *, attn_scale, n_pos, num_batch, num_concepts):
    f32 = jnp.float32

    # conv2 (3x3, stride 2) as one GEMM over the whole batch: (D,144)@(144,B*N).
    xt = jnp.maximum(
        jnp.dot(w2m_ref[...], p2t_ref[...], preferred_element_type=f32)
        + b2_ref[...], 0.0)                                     # (D, B*N) features

    # Key path: k^T = Wk @ (x + pos_enc)^T + bk.
    kt = jnp.dot(wk_ref[...], xt + pet_ref[...],
                 preferred_element_type=f32) + bk_ref[...]      # (D, B*N)

    # ScouterAttention (fixed initial slots -> single pass), sigmoid attention.
    dots = jnp.dot(slots_ref[...], kt, preferred_element_type=f32) * attn_scale
    attn = jax.nn.sigmoid(dots)                                 # (C, B*N)
    attn_ref[...] = attn

    # Per-(image, concept) attention sums via a 0/1 segment-indicator GEMM.
    segt = segt_ref[...]                                        # (B, B*N)
    sums_bc = jax.lax.dot_general(segt, attn, (((1,), (1,)), ((), ())),
                                  preferred_element_type=f32)   # (B, C)
    sums_cb = jax.lax.dot_general(attn, segt, (((1,), (1,)), ((), ())),
                                  preferred_element_type=f32)   # (C, B)
    recip_cb = pl.reciprocal(sums_cb + 1e-6, approx=True)       # EUP, ~free

    # Slot updates: updates[b] = (attn_b / sum_b) @ x_b  (one small GEMM per image).
    for b in range(num_batch):
        cols = slice(b * n_pos, (b + 1) * n_pos)
        upd_b = jax.lax.dot_general(attn[:, cols], xt[:, cols],
                                    (((1,), (1,)), ((), ())),
                                    preferred_element_type=f32)  # (C, D)
        upd_ref[b] = upd_b * recip_cb[:, b:b + 1]

    # Concept activations + heads, batched over all images (one GEMM each).
    cpt = jnp.tanh(sums_bc)                                      # (B, C)
    h_agg = jnp.maximum(
        jnp.dot(cpt, wa1_ref[...], preferred_element_type=f32) + ba1_ref[...], 0.0)
    pred = jnp.dot(h_agg, wa2_ref[...], preferred_element_type=f32) + ba2_ref[...]
    h_rec = jnp.maximum(
        jnp.dot(cpt, wf1_ref[...], preferred_element_type=f32) + bf1_ref[...], 0.0)
    rec = jnp.tanh(
        jnp.dot(h_rec, wf2_ref[...], preferred_element_type=f32) + bf2_ref[...])

    # Packed lane-major output slab: [ (cpt-0.5)*2 | pred | reconstruction ].
    c = num_concepts
    slab_ref[:, 0:c] = (cpt - 0.5) * 2.0
    slab_ref[:, c:c + 10] = pred
    slab_ref[:, c + 10:c + 10 + 784] = rec


# ----------------------------------------------------------------------------
# Sine positional encoding (DETR style, normalize=True).  Input-independent, so
# XLA constant-folds it at trace time.
# ----------------------------------------------------------------------------
def sine_position_encoding(h, w, num_pos_feats, temperature=10000.0):
    scale = 2.0 * math.pi
    eps = 1e-6
    ones = jnp.ones((h, w), jnp.float32)
    y_embed = jnp.cumsum(ones, axis=0)
    x_embed = jnp.cumsum(ones, axis=1)
    y_embed = y_embed / (y_embed[-1:, :] + eps) * scale
    x_embed = x_embed / (x_embed[:, -1:] + eps) * scale
    dim_t = jnp.arange(num_pos_feats, dtype=jnp.float32)
    dim_t = temperature ** (2.0 * jnp.floor(dim_t / 2.0) / num_pos_feats)
    pos_x = x_embed[:, :, None] / dim_t
    pos_y = y_embed[:, :, None] / dim_t
    pos_x = jnp.stack([jnp.sin(pos_x[:, :, 0::2]), jnp.cos(pos_x[:, :, 1::2])],
                      axis=-1).reshape(h, w, num_pos_feats)
    pos_y = jnp.stack([jnp.sin(pos_y[:, :, 0::2]), jnp.cos(pos_y[:, :, 1::2])],
                      axis=-1).reshape(h, w, num_pos_feats)
    return jnp.concatenate([pos_y, pos_x], axis=-1)              # (h, w, 2*num_pos_feats)


# ----------------------------------------------------------------------------
# Forward pass wrapper.
# ----------------------------------------------------------------------------
def concept_autoencoder_forward(x, p, num_concepts, hidden_dim=32):
    B = x.shape[0]
    C = num_concepts
    N = 49                                                       # 7*7 conv2 positions
    f32 = jnp.float32

    # ---- conv1 im2col (transposed: rows = Cin*KH*KW = 9, cols = B*14*14) ----
    xp = jnp.pad(x[:, 0], ((0, 0), (1, 1), (1, 1)))              # (B, 30, 30)
    taps1 = jnp.stack([xp[:, kh:kh + 27:2, kw:kw + 27:2]
                       for kh in range(3) for kw in range(3)], axis=0)  # (9, B, 14, 14)
    p1t = taps1.reshape(9, B * 196).astype(f32)

    h1t = pl.pallas_call(
        _conv1_kernel,
        out_shape=jax.ShapeDtypeStruct((16, B * 196), f32),
    )(p1t, p["conv1_w"].reshape(16, 9), p["conv1_b"].reshape(16, 1))

    # ---- conv2 im2col (transposed: rows = 16*9 = 144, cols = B*7*7) ----
    h1 = h1t.reshape(16, B, 14, 14)
    h1p = jnp.pad(h1, ((0, 0), (0, 0), (1, 1), (1, 1)))          # (16, B, 16, 16)
    taps2 = jnp.stack([h1p[:, :, kh:kh + 13:2, kw:kw + 13:2]
                       for kh in range(3) for kw in range(3)], axis=1)  # (16, 9, B, 7, 7)
    p2t = taps2.reshape(16 * 9, B * N)

    # ---- constants: transposed+tiled sine positional encoding, segment ids ----
    pe = sine_position_encoding(7, 7, hidden_dim // 2).reshape(N, hidden_dim)
    pet = jnp.tile(pe.T, (1, B))                                 # (D, B*N)
    segt = jnp.repeat(jnp.eye(B, dtype=f32), N, axis=1)          # (B, B*N)

    slab, attn_cbn, updates = pl.pallas_call(
        functools.partial(_fused_kernel,
                          attn_scale=float(hidden_dim) ** -0.5,
                          n_pos=N, num_batch=B, num_concepts=C),
        out_shape=(
            jax.ShapeDtypeStruct((B, C + 10 + 784), f32),        # packed [cpt|pred|rec]
            jax.ShapeDtypeStruct((C, B * N), f32),               # attention (C, B*N)
            jax.ShapeDtypeStruct((B, C, hidden_dim), f32),       # slot updates
        ),
    )(p2t, pet, segt,
      p["conv2_w"].reshape(hidden_dim, 144), p["conv2_b"].reshape(hidden_dim, 1),
      p["to_k_w"], p["to_k_b"].reshape(hidden_dim, 1),
      p["slots"],
      p["agg_fc1_w"].T, p["agg_fc1_b"].reshape(1, C),
      p["agg_fc2_w"].T, p["agg_fc2_b"].reshape(1, 10),
      p["fc1_w"].T, p["fc1_b"].reshape(1, 400),
      p["fc2_w"].T, p["fc2_b"].reshape(1, 784))

    cpt2 = slab[:, :C]
    pred = slab[:, C:C + 10]
    rec = slab[:, C + 10:]
    attn = jnp.transpose(attn_cbn.reshape(C, B, N), (1, 0, 2))   # (B, C, N)
    # Return order matches PyTorch: ((cpt-0.5)*2, pred, x_reconstruction, attn, updates)
    return cpt2, pred, rec, attn, updates


def init_params(key, num_concepts, hidden_dim=32):
    ks = jax.random.split(key, 15)
    s = 0.1
    n = lambda k, shape: jax.random.normal(k, shape, jnp.float32) * s
    return {
        "conv1_w": n(ks[0], (16, 1, 3, 3)),      "conv1_b": n(ks[1], (16,)),
        "conv2_w": n(ks[2], (hidden_dim, 16, 3, 3)), "conv2_b": n(ks[3], (hidden_dim,)),
        "to_k_w":  n(ks[4], (hidden_dim, hidden_dim)), "to_k_b": n(ks[5], (hidden_dim,)),
        "slots":   n(ks[6], (num_concepts, hidden_dim)),
        "agg_fc1_w": n(ks[7], (num_concepts, num_concepts)), "agg_fc1_b": n(ks[8], (num_concepts,)),
        "agg_fc2_w": n(ks[9], (10, num_concepts)),           "agg_fc2_b": n(ks[10], (10,)),
        "fc1_w": n(ks[11], (400, num_concepts)),  "fc1_b": n(ks[12], (400,)),
        "fc2_w": n(ks[13], (784, 400)),           "fc2_b": n(ks[14], (784,)),
    }


if __name__ == "__main__":
    key = jax.random.PRNGKey(0)
    B = 2
    num_concepts = 10
    k_x, k_p = jax.random.split(key)
    x = jax.random.normal(k_x, (B, 1, 28, 28), jnp.float32)
    params = init_params(k_p, num_concepts)

    fwd = jax.jit(lambda xx, pp: concept_autoencoder_forward(xx, pp, num_concepts))
    outs = jax.block_until_ready(fwd(x, params))
    cpt2, pred, rec, attn, updates = outs

    assert cpt2.shape == (B, num_concepts)
    assert pred.shape == (B, 10)
    assert rec.shape == (B, 28 * 28)
    assert attn.shape == (B, num_concepts, 7 * 7)
    assert updates.shape == (B, num_concepts, 32)
    assert all(bool(jnp.all(jnp.isfinite(o))) for o in outs)
    print("KERNEL_OK")
</pallas_src>

<mosaic_0001>
module attributes {stable_mosaic.version = 11 : i64} {
  func.func @_conv1_kernel(%arg0: memref<9x392xf32, #tpu.memory_space<vmem>>, %arg1: memref<16x9xf32, #tpu.memory_space<vmem>>, %arg2: memref<16x1xf32, #tpu.memory_space<vmem>>, %arg3: memref<16x392xf32, #tpu.memory_space<vmem>>) attributes {dimension_semantics = [], scalar_prefetch = 0 : i64, scratch_operands = 0 : i64, tpu.core_type = #tpu.core_type<tc>} {
    %c0 = arith.constant 0 : index
    %c0_0 = arith.constant 0 : index
    %0 = vector.load %arg1[%c0, %c0_0] : memref<16x9xf32, #tpu.memory_space<vmem>>, vector<16x9xf32>
    %c0_1 = arith.constant 0 : index
    %c0_2 = arith.constant 0 : index
    %1 = vector.load %arg0[%c0_1, %c0_2] : memref<9x392xf32, #tpu.memory_space<vmem>>, vector<9x392xf32>
    %cst = arith.constant dense<0.000000e+00> : vector<16x392xf32>
    %2 = tpu.matmul %0, %1, %cst {dimension_numbers = #tpu.dot_dimension_numbers<[1], [0], [0], [1], [0, 0, 1, 1], [], []>} : vector<16x9xf32>, vector<9x392xf32>, vector<16x392xf32> -> vector<16x392xf32>
    %c0_3 = arith.constant 0 : index
    %c0_4 = arith.constant 0 : index
    %3 = vector.load %arg2[%c0_3, %c0_4] : memref<16x1xf32, #tpu.memory_space<vmem>>, vector<16x1xf32>
    %4 = vector.broadcast %3 : vector<16x1xf32> to vector<16x392xf32>
    %5 = arith.addf %2, %4 : vector<16x392xf32>
    %cst_5 = arith.constant 0.000000e+00 : f32
    %6 = vector.broadcast %cst_5 : f32 to vector<16x392xf32>
    %7 = arith.maximumf %5, %6 : vector<16x392xf32>
    %c0_6 = arith.constant 0 : index
    %c0_7 = arith.constant 0 : index
    %8 = vector.load %arg3[%c0_6, %c0_7] : memref<16x392xf32, #tpu.memory_space<vmem>>, vector<16x392xf32>
    tpu.vector_store %arg3[%c0_6, %c0_7], %7 {strides = array<i32>} : memref<16x392xf32, #tpu.memory_space<vmem>>, vector<16x392xf32>,
    return
  }
}

module attributes {stable_mosaic.version = 11 : i64} {
  func.func @_fused_kernel(%arg0: memref<144x98xf32, #tpu.memory_space<vmem>>, %arg1: memref<32x98xf32, #tpu.memory_space<vmem>>, %arg2: memref<2x98xf32, #tpu.memory_space<vmem>>, %arg3: memref<32x144xf32, #tpu.memory_space<vmem>>, %arg4: memref<32x1xf32, #tpu.memory_space<vmem>>, %arg5: memref<32x32xf32, #tpu.memory_space<vmem>>, %arg6: memref<32x1xf32, #tpu.memory_space<vmem>>, %arg7: memref<10x32xf32, #tpu.memory_space<vmem>>, %arg8: memref<10x10xf32, #tpu.memory_space<vmem>>, %arg9: memref<1x10xf32, #tpu.memory_space<vmem>>, %arg10: memref<10x10xf32, #tpu.memory_space<vmem>>, %arg11: memref<1x10xf32, #tpu.memory_space<vmem>>, %arg12: memref<10x400xf32, #tpu.memory_space<vmem>>, %arg13: memref<1x400xf32, #tpu.memory_space<vmem>>, %arg14: memref<400x784xf32, #tpu.memory_space<vmem>>, %arg15: memref<1x784xf32, #tpu.memory_space<vmem>>, %arg16: memref<2x804xf32, #tpu.memory_space<vmem>>, %arg17: memref<10x98xf32, #tpu.memory_space<vmem>>, %arg18: memref<2x10x32xf32, #tpu.memory_space<vmem>>) attributes {dimension_semantics = [], scalar_prefetch = 0 : i64, scratch_operands = 0 : i64, tpu.core_type = #tpu.core_type<tc>} {
    %c0 = arith.constant 0 : index
    %c0_0 = arith.constant 0 : index
    %0 = vector.load %arg3[%c0, %c0_0] : memref<32x144xf32, #tpu.memory_space<vmem>>, vector<32x144xf32>
    %c0_1 = arith.constant 0 : index
    %c0_2 = arith.constant 0 : index
    %1 = vector.load %arg0[%c0_1, %c0_2] : memref<144x98xf32, #tpu.memory_space<vmem>>, vector<144x98xf32>
    %cst = arith.constant dense<0.000000e+00> : vector<32x98xf32>
    %2 = tpu.matmul %0, %1, %cst {dimension_numbers = #tpu.dot_dimension_numbers<[1], [0], [0], [1], [0, 0, 1, 1], [], []>} : vector<32x144xf32>, vector<144x98xf32>, vector<32x98xf32> -> vector<32x98xf32>
    %c0_3 = arith.constant 0 : index
    %c0_4 = arith.constant 0 : index
    %3 = vector.load %arg4[%c0_3, %c0_4] : memref<32x1xf32, #tpu.memory_space<vmem>>, vector<32x1xf32>
    %4 = vector.broadcast %3 : vector<32x1xf32> to vector<32x98xf32>
    %5 = arith.addf %2, %4 : vector<32x98xf32>
    %cst_5 = arith.constant 0.000000e+00 : f32
    %6 = vector.broadcast %cst_5 : f32 to vector<32x98xf32>
    %7 = arith.maximumf %5, %6 : vector<32x98xf32>
    %c0_6 = arith.constant 0 : index
    %c0_7 = arith.constant 0 : index
    %8 = vector.load %arg5[%c0_6, %c0_7] : memref<32x32xf32, #tpu.memory_space<vmem>>, vector<32x32xf32>
    %c0_8 = arith.constant 0 : index
    %c0_9 = arith.constant 0 : index
    %9 = vector.load %arg1[%c0_8, %c0_9] : memref<32x98xf32, #tpu.memory_space<vmem>>, vector<32x98xf32>
    %10 = arith.addf %7, %9 : vector<32x98xf32>
    %cst_10 = arith.constant dense<0.000000e+00> : vector<32x98xf32>
    %11 = tpu.matmul %8, %10, %cst_10 {dimension_numbers = #tpu.dot_dimension_numbers<[1], [0], [0], [1], [0, 0, 1, 1], [], []>} : vector<32x32xf32>, vector<32x98xf32>, vector<32x98xf32> -> vector<32x98xf32>
    %c0_11 = arith.constant 0 : index
    %c0_12 = arith.constant 0 : index
    %12 = vector.load %arg6[%c0_11, %c0_12] : memref<32x1xf32, #tpu.memory_space<vmem>>, vector<32x1xf32>
    %13 = vector.broadcast %12 : vector<32x1xf32> to vector<32x98xf32>
    %14 = arith.addf %11, %13 : vector<32x98xf32>
    %c0_13 = arith.constant 0 : index
    %c0_14 = arith.constant 0 : index
    %15 = vector.load %arg7[%c0_13, %c0_14] : memref<10x32xf32, #tpu.memory_space<vmem>>, vector<10x32xf32>
    %cst_15 = arith.constant dense<0.000000e+00> : vector<10x98xf32>
    %16 = tpu.matmul %15, %14, %cst_15 {dimension_numbers = #tpu.dot_dimension_numbers<[1], [0], [0], [1], [0, 0, 1, 1], [], []>} : vector<10x32xf32>, vector<32x98xf32>, vector<10x98xf32> -> vector<10x98xf32>
    %cst_16 = arith.constant 0.176776692 : f32
    %17 = vector.broadcast %cst_16 : f32 to vector<10x98xf32>
    %18 = arith.mulf %16, %17 : vector<10x98xf32>
    %19 = arith.negf %18 : vector<10x98xf32>
    %20 = math.exp %19 : vector<10x98xf32>
    %cst_17 = arith.constant 1.000000e+00 : f32
    %21 = vector.broadcast %cst_17 : f32 to vector<10x98xf32>
    %22 = arith.addf %21, %20 : vector<10x98xf32>
    %23 = arith.divf %21, %22 : vector<10x98xf32>
    %c0_18 = arith.constant 0 : index
    %c0_19 = arith.constant 0 : index
    %24 = vector.load %arg17[%c0_18, %c0_19] : memref<10x98xf32, #tpu.memory_space<vmem>>, vector<10x98xf32>
    tpu.vector_store %arg17[%c0_18, %c0_19], %23 {strides = array<i32>} : memref<10x98xf32, #tpu.memory_space<vmem>>, vector<10x98xf32>,
    %c0_20 = arith.constant 0 : index
    %c0_21 = arith.constant 0 : index
    %25 = vector.load %arg2[%c0_20, %c0_21] : memref<2x98xf32, #tpu.memory_space<vmem>>, vector<2x98xf32>
    %cst_22 = arith.constant dense<0.000000e+00> : vector<2x10xf32>
    %26 = tpu.matmul %25, %23, %cst_22 {dimension_numbers = #tpu.dot_dimension_numbers<[1], [1], [0], [0], [0, 0, 1, 0], [], []>} : vector<2x98xf32>, vector<10x98xf32>, vector<2x10xf32> -> vector<2x10xf32>
    %cst_23 = arith.constant dense<0.000000e+00> : vector<10x2xf32>
    %27 = tpu.matmul %23, %25, %cst_23 {dimension_numbers = #tpu.dot_dimension_numbers<[1], [1], [0], [0], [0, 0, 1, 0], [], []>} : vector<10x98xf32>, vector<2x98xf32>, vector<10x2xf32> -> vector<10x2xf32>
    %cst_24 = arith.constant 9.99999997E-7 : f32
    %28 = vector.broadcast %cst_24 : f32 to vector<10x2xf32>
    %29 = arith.addf %27, %28 : vector<10x2xf32>
    %30 = tpu.reciprocal %29 {approx = true} : vector<10x2xf32> -> vector<10x2xf32>
    %31 = vector.extract_strided_slice %23 {offsets = [0, 0], sizes = [10, 49], strides = [1, 1]} : vector<10x98xf32> to vector<10x49xf32>
    %32 = vector.extract_strided_slice %7 {offsets = [0, 0], sizes = [32, 49], strides = [1, 1]} : vector<32x98xf32> to vector<32x49xf32>
    %cst_25 = arith.constant dense<0.000000e+00> : vector<10x32xf32>
    %33 = tpu.matmul %31, %32, %cst_25 {dimension_numbers = #tpu.dot_dimension_numbers<[1], [1], [0], [0], [0, 0, 1, 0], [], []>} : vector<10x49xf32>, vector<32x49xf32>, vector<10x32xf32> -> vector<10x32xf32>
    %34 = vector.extract_strided_slice %30 {offsets = [0, 0], sizes = [10, 1], strides = [1, 1]} : vector<10x2xf32> to vector<10x1xf32>
    %35 = vector.broadcast %34 : vector<10x1xf32> to vector<10x32xf32>
    %36 = arith.mulf %33, %35 : vector<10x32xf32>
    %c0_26 = arith.constant 0 : index
    %c0_27 = arith.constant 0 : index
    %c0_28 = arith.constant 0 : index
    %37 = vector.load %arg18[%c0_26, %c0_27, %c0_28] : memref<2x10x32xf32, #tpu.memory_space<vmem>>, vector<1x10x32xf32>
    %38 = vector.shape_cast %37 : vector<1x10x32xf32> to vector<10x32xf32>
    %39 = vector.shape_cast %36 : vector<10x32xf32> to vector<1x10x32xf32>
    tpu.vector_store %arg18[%c0_26, %c0_27, %c0_28], %39 {strides = array<i32>} : memref<2x10x32xf32, #tpu.memory_space<vmem>>, vector<1x10x32xf32>,
    %40 = vector.extract_strided_slice %23 {offsets = [0, 49], sizes = [10, 49], strides = [1, 1]} : vector<10x98xf32> to vector<10x49xf32>
    %41 = vector.extract_strided_slice %7 {offsets = [0, 49], sizes = [32, 49], strides = [1, 1]} : vector<32x98xf32> to vector<32x49xf32>
    %cst_29 = arith.constant dense<0.000000e+00> : vector<10x32xf32>
    %42 = tpu.matmul %40, %41, %cst_29 {dimension_numbers = #tpu.dot_dimension_numbers<[1], [1], [0], [0], [0, 0, 1, 0], [], []>} : vector<10x49xf32>, vector<32x49xf32>, vector<10x32xf32> -> vector<10x32xf32>
    %43 = vector.extract_strided_slice %30 {offsets = [0, 1], sizes = [10, 1], strides = [1, 1]} : vector<10x2xf32> to vector<10x1xf32>
    %44 = vector.broadcast %43 : vector<10x1xf32> to vector<10x32xf32>
    %45 = arith.mulf %42, %44 : vector<10x32xf32>
    %c1 = arith.constant 1 : index
    %c0_30 = arith.constant 0 : index
    %c0_31 = arith.constant 0 : index
    %46 = vector.load %arg18[%c1, %c0_30, %c0_31] : memref<2x10x32xf32, #tpu.memory_space<vmem>>, vector<1x10x32xf32>
    %47 = vector.shape_cast %46 : vector<1x10x32xf32> to vector<10x32xf32>
    %48 = vector.shape_cast %45 : vector<10x32xf32> to vector<1x10x32xf32>
    tpu.vector_store %arg18[%c1, %c0_30, %c0_31], %48 {strides = array<i32>} : memref<2x10x32xf32, #tpu.memory_space<vmem>>, vector<1x10x32xf32>,
    %49 = math.tanh %26 : vector<2x10xf32>
    %c0_32 = arith.constant 0 : index
    %c0_33 = arith.constant 0 : index
    %50 = vector.load %arg8[%c0_32, %c0_33] : memref<10x10xf32, #tpu.memory_space<vmem>>, vector<10x10xf32>
    %cst_34 = arith.constant dense<0.000000e+00> : vector<2x10xf32>
    %51 = tpu.matmul %49, %50, %cst_34 {dimension_numbers = #tpu.dot_dimension_numbers<[1], [0], [0], [1], [0, 0, 1, 1], [], []>} : vector<2x10xf32>, vector<10x10xf32>, vector<2x10xf32> -> vector<2x10xf32>
    %c0_35 = arith.constant 0 : index
    %c0_36 = arith.constant 0 : index
    %52 = vector.load %arg9[%c0_35, %c0_36] : memref<1x10xf32, #tpu.memory_space<vmem>>, vector<1x10xf32>
    %53 = vector.broadcast %52 : vector<1x10xf32> to vector<2x10xf32>
    %54 = arith.addf %51, %53 : vector<2x10xf32>
    %cst_37 = arith.constant 0.000000e+00 : f32
    %55 = vector.broadcast %cst_37 : f32 to vector<2x10xf32>
    %56 = arith.maximumf %54, %55 : vector<2x10xf32>
    %c0_38 = arith.constant 0 : index
    %c0_39 = arith.constant 0 : index
    %57 = vector.load %arg10[%c0_38, %c0_39] : memref<10x10xf32, #tpu.memory_space<vmem>>, vector<10x10xf32>
    %cst_40 = arith.constant dense<0.000000e+00> : vector<2x10xf32>
    %58 = tpu.matmul %56, %57, %cst_40 {dimension_numbers = #tpu.dot_dimension_numbers<[1], [0], [0], [1], [0, 0, 1, 1], [], []>} : vector<2x10xf32>, vector<10x10xf32>, vector<2x10xf32> -> vector<2x10xf32>
    %c0_41 = arith.constant 0 : index
    %c0_42 = arith.constant 0 : index
    %59 = vector.load %arg11[%c0_41, %c0_42] : memref<1x10xf32, #tpu.memory_space<vmem>>, vector<1x10xf32>
    %60 = vector.broadcast %59 : vector<1x10xf32> to vector<2x10xf32>
    %61 = arith.addf %58, %60 : vector<2x10xf32>
    %c0_43 = arith.constant 0 : index
    %c0_44 = arith.constant 0 : index
    %62 = vector.load %arg12[%c0_43, %c0_44] : memref<10x400xf32, #tpu.memory_space<vmem>>, vector<10x400xf32>
    %cst_45 = arith.constant dense<0.000000e+00> : vector<2x400xf32>
    %63 = tpu.matmul %49, %62, %cst_45 {dimension_numbers = #tpu.dot_dimension_numbers<[1], [0], [0], [1], [0, 0, 1, 1], [], []>} : vector<2x10xf32>, vector<10x400xf32>, vector<2x400xf32> -> vector<2x400xf32>
    %c0_46 = arith.constant 0 : index
    %c0_47 = arith.constant 0 : index
    %64 = vector.load %arg13[%c0_46, %c0_47] : memref<1x400xf32, #tpu.memory_space<vmem>>, vector<1x400xf32>
    %65 = vector.broadcast %64 : vector<1x400xf32> to vector<2x400xf32>
    %66 = arith.addf %63, %65 : vector<2x400xf32>
    %cst_48 = arith.constant 0.000000e+00 : f32
    %67 = vector.broadcast %cst_48 : f32 to vector<2x400xf32>
    %68 = arith.maximumf %66, %67 : vector<2x400xf32>
    %c0_49 = arith.constant 0 : index
    %c0_50 = arith.constant 0 : index
    %69 = vector.load %arg14[%c0_49, %c0_50] : memref<400x784xf32, #tpu.memory_space<vmem>>, vector<400x784xf32>
    %cst_51 = arith.constant dense<0.000000e+00> : vector<2x784xf32>
    %70 = tpu.matmul %68, %69, %cst_51 {dimension_numbers = #tpu.dot_dimension_numbers<[1], [0], [0], [1], [0, 0, 1, 1], [], []>} : vector<2x400xf32>, vector<400x784xf32>, vector<2x784xf32> -> vector<2x784xf32>
    %c0_52 = arith.constant 0 : index
    %c0_53 = arith.constant 0 : index
    %71 = vector.load %arg15[%c0_52, %c0_53] : memref<1x784xf32, #tpu.memory_space<vmem>>, vector<1x784xf32>
    %72 = vector.broadcast %71 : vector<1x784xf32> to vector<2x784xf32>
    %73 = arith.addf %70, %72 : vector<2x784xf32>
    %74 = math.tanh %73 : vector<2x784xf32>
    %cst_54 = arith.constant 5.000000e-01 : f32
    %75 = vector.broadcast %cst_54 : f32 to vector<2x10xf32>
    %76 = arith.subf %49, %75 : vector<2x10xf32>
    %cst_55 = arith.constant 2.000000e+00 : f32
    %77 = vector.broadcast %cst_55 : f32 to vector<2x10xf32>
    %78 = arith.mulf %76, %77 : vector<2x10xf32>
    %c0_56 = arith.constant 0 : index
    %c0_57 = arith.constant 0 : index
    %79 = vector.load %arg16[%c0_56, %c0_57] : memref<2x804xf32, #tpu.memory_space<vmem>>, vector<2x10xf32>
    tpu.vector_store %arg16[%c0_56, %c0_57], %78 {strides = array<i32>} : memref<2x804xf32, #tpu.memory_space<vmem>>, vector<2x10xf32>,
    %c0_58 = arith.constant 0 : index
    %c10 = arith.constant 10 : index
    %80 = vector.load %arg16[%c0_58, %c10] : memref<2x804xf32, #tpu.memory_space<vmem>>, vector<2x10xf32>
    tpu.vector_store %arg16[%c0_58, %c10], %61 {strides = array<i32>} : memref<2x804xf32, #tpu.memory_space<vmem>>, vector<2x10xf32>,
    %c0_59 = arith.constant 0 : index
    %c20 = arith.constant 20 : index
    %81 = vector.load %arg16[%c0_59, %c20] : memref<2x804xf32, #tpu.memory_space<vmem>>, vector<2x784xf32>
    tpu.vector_store %arg16[%c0_59, %c20], %74 {strides = array<i32>} : memref<2x804xf32, #tpu.memory_space<vmem>>, vector<2x784xf32>,
    return
  }
}

</mosaic_0001>

<bundles_post_ra>
// kernel: _lambda_.2
= control target key start
LH: loop header
LB: loop body
LE: loop exit
PB: predicated region body
PF: predicated region fallthrough
CT: control target
= control target key end

     0   :  { %vm43_vm0 = vcmask 1040384   ;;  %v242_v3 = vmov 0.0   ;;  %vm36_vm1 = vcmask 72704   ;;  %v243_v12 = vmov 0   ;;  %s330_s0 = inlined_call_operand.vmem [shape: f32[9,392], index: 0, kind: input, shape index: {}]   ;;  %s331_s1 = inlined_call_operand.vmem [shape: f32[16,9], index: 1, kind: input, shape index: {}]   ;;  %s332_s2 = inlined_call_operand.vmem [shape: f32[16,1], index: 2, kind: input, shape index: {}]   ;;  %s333_s3 = inlined_call_operand.vmem [shape: f32[16,392], index: 3, kind: output, shape index: {}]  }
   0x1   :  { %v21_v0 = vld [vmem:[%s330_s0 + $0x28] sm:$0x1]  ;;  %v23_v1 = vld [vmem:[%s330_s0 + $0x38] sm:$0x1]  ;;  %v20_v2 = vld [vmem:[%s330_s0 + $0x20] sm:$0x1]  ;;  %120 = vmatprep.mubr.f32.mxu0 %v242_v3  ;;  %197 = vmatprep.mubr.f32.mxu1 %v242_v3 }
   0x2   :  { %231 = vmatprep.subr.msk.mxu0 %vm43_vm0, %v21_v0  ;;  %235 = vmatprep.subr.msk.mxu1 %vm43_vm0, %v23_v1  ;;  %v22_v4 = vld [vmem:[%s330_s0 + $0x30] sm:$0x1]  ;;  %v17_v5 = vld [vmem:[%s330_s0 + $0x8] sm:$0xff]  ;;  %v19_v6 = vld [vmem:[%s330_s0 + $0x18] sm:$0xff]  ;;  %vm221_vm2 = vcmask 64512  }
   0x3   :  { %232 = vmatpush1.msk.msra.mxu0 %vm43_vm0, %v20_v2  ;;  %236 = vmatpush1.msk.msra.mxu1 %vm43_vm0, %v22_v4  ;;  %v16_v7 = vld [vmem:[%s330_s0] sm:$0xff]  ;;  %v18_v8 = vld [vmem:[%s330_s0 + $0x10] sm:$0xff]  ;;  %v15_v11 = vld [vmem:[%s331_s1 + $0x8] sm:$0xff] }
   0x4   :  { %v14_v9 = vld [vmem:[%s331_s1] sm:$0xff]  ;;  %86 = vmatprep.subr.mxu0 %v17_v5  ;;  %163 = vmatprep.subr.mxu1 %v19_v6  ;;  %v25_v13 = vld [vmem:[%s332_s2 + $0x8] sm:$0xff] }
   0x5   :  { %87 = vmatpush1.msra.mxu0 %v16_v7  ;;  %164 = vmatpush1.msra.mxu1 %v18_v8  ;;  %v24_v10 = vld [vmem:[%s332_s2] sm:$0xff] }
   0x6   :  { %233 = vmatmul.mubr.msk.f32.vlgmr.msra.gmra.mxu0 %vm36_vm1, %v14_v9  ;;  %237 = vmatmul.mubr.msk.f32.vlgmr.msra.gmra.mxu1 %vm36_vm1, %v14_v9 }
   0x7   :  { %126 = vmatprep.mubr.f32.mxu0 %v242_v3  ;;  %203 = vmatprep.mubr.f32.mxu1 %v242_v3 }
   0x8   :  { %241 = vset.pattern.permute.xlu0 %v243_v12 }
   0x9   :  { %28 = vperm.xlu0 %241, %v24_v10  }
   0xa   :  { %234 = vmatmul.mubr.msk.f32.gmra.mxu0 %vm36_vm1, %v15_v11  ;;  %238 = vmatmul.mubr.msk.f32.gmra.mxu1 %vm36_vm1, %v15_v11 }
   0xd   :  { %33 = vperm.xlu0 %241, %v25_v13  }
  0x84   :  { %v29_v14 = vpop.permute.xlu0 %28 }
  0x88   :  { %v34_v23 = vpop.permute.xlu0 %33 }
  0xc6   :  { %v122_v15 = vpop.f32.mrf.mxu0  ;;  %v199_v16 = vpop.f32.mrf.mxu1 }
  0xc7   :  { %v123_v17 = vadd.f32 %v122_v15, %v29_v14  ;;  %v200_v18 = vadd.f32 %v199_v16, %v29_v14 }
  0xc8   :  { %v124_v19 = vpop.f32.mrf.mxu0  ;;  %v201_v20 = vpop.f32.mrf.mxu1 }
  0xc9   :  { %v210_v21 = vmax.f32 %v123_v17, 0.0  ;;  %v212_v22 = vmax.f32 %v200_v18, 0.0  ;;  %v125_v24 = vadd.f32 %v124_v19, %v29_v14  ;;  %v202_v25 = vadd.f32 %v201_v20, %v29_v14 }
  0xca   :  { %v128_v26 = vpop.f32.mrf.mxu0  ;;  %v205_v27 = vpop.f32.mrf.mxu1 }
  0xcb   :  { %218 = vst [vmem:[%s333_s3] sm:$0xff] %v210_v21  ;;  %220 = vst [vmem:[%s333_s3 + $0x10] sm:$0xff] %v212_v22  ;;  %v211_v28 = vmax.f32 %v125_v24, 0.0  ;;  %v213_v29 = vmax.f32 %v202_v25, 0.0  ;;  %v129_v30 = vadd.f32 %v128_v26, %v34_v23  ;;  %v206_v31 = vadd.f32 %v205_v27, %v34_v23 }
  0xcc   :  { %v130_v32 = vpop.f32.mrf.mxu0  ;;  %v207_v33 = vpop.f32.mrf.mxu1 }
  0xcd   :  { %219 = vst [vmem:[%s333_s3 + $0x8] sm:$0xff] %v211_v28  ;;  %222 = vst.msk [vmem:[%s333_s3 + $0x18] sm:$0xff] %vm221_vm2, %v213_v29  ;;  %v214_v34 = vmax.f32 %v129_v30, 0.0  ;;  %v216_v35 = vmax.f32 %v206_v31, 0.0  ;;  %v131_v36 = vadd.f32 %v130_v32, %v34_v23  ;;  %v208_v37 = vadd.f32 %v207_v33, %v34_v23 }
  0xcf   :  { %223 = vst [vmem:[%s333_s3 + $0x20] sm:$0xff] %v214_v34  ;;  %225 = vst [vmem:[%s333_s3 + $0x30] sm:$0xff] %v216_v35  ;;  %v215_v38 = vmax.f32 %v131_v36, 0.0  ;;  %v217_v39 = vmax.f32 %v208_v37, 0.0 }
  0xd1   :  { %224 = vst [vmem:[%s333_s3 + $0x28] sm:$0xff] %v215_v38  ;;  %226 = vst.msk [vmem:[%s333_s3 + $0x38] sm:$0xff] %vm221_vm2, %v217_v39 }

// kernel: tile.9
= control target key start
LH: loop header
LB: loop body
LE: loop exit
PB: predicated region body
PF: predicated region fallthrough
CT: control target
= control target key end

     0   :  { %vm163_vm0 = vcmask 1047556   ;;  %s305_s10 = smov 49   ;;  %vm165_vm1 = vcmask 400384   ;;  %vm202_vm2 = vcmask 802184   ;;  %s452_s0 = inlined_call_operand.vmem [shape: f32[32,2,49], index: 0, kind: input, shape index: {}]   ;;  %s453_s1 = inlined_call_operand.vmem [shape: f32[32,98], index: 1, kind: output, shape index: {}]  }
   0x1   :  { %v291_v0 = vld [vmem:[%s452_s0 + $0xe] sm:$0x3]  ;;  %v292_v1 = vld [vmem:[%s452_s0 + $0xc] sm:$0x3]  ;;  %v293_v2 = vld [vmem:[%s452_s0 + $0xa] sm:$0x3] }
   0x2   :  { %129 = vst [vmem:[#allocation0 + $0x38] sm:$0x3] %v291_v0  ;;  %134 = vst [vmem:[#allocation0 + $0x30] sm:$0x3] %v292_v1  ;;  %v294_v3 = vld [vmem:[%s452_s0 + $0x8] sm:$0x3] }
   0x3   :  { %139 = vst [vmem:[#allocation0 + $0x28] sm:$0x3] %v293_v2  ;;  %v295_v4 = vld [vmem:[%s452_s0 + $0x6] sm:$0x3]  ;;  %v296_v5 = vld [vmem:[%s452_s0 + $0x4] sm:$0x3] }
   0x4   :  { %144 = vst [vmem:[#allocation0 + $0x20] sm:$0x3] %v294_v3  ;;  %149 = vst [vmem:[#allocation0 + $0x18] sm:$0x3] %v295_v4  ;;  %v297_v6 = vld [vmem:[%s452_s0 + $0x2] sm:$0x3] }
   0x5   :  { %154 = vst [vmem:[#allocation0 + $0x10] sm:$0x3] %v296_v5  ;;  %v159_v7 = vld [vmem:[%s452_s0] sm:$0x3]  ;;  %158 = vst [vmem:[#allocation0 + $0x8] sm:$0x3] %v297_v6 }
   0x6   :  { %160 = vst [vmem:[#allocation0] sm:$0x3] %v159_v7  ;;  %v275_v8 = vld [vmem:[%s452_s0 + $0x2e] sm:$0x3]  ;;  %v276_v9 = vld [vmem:[%s452_s0 + $0x2c] sm:$0x3] }
   0x7   :  { %v277_v10 = vld [vmem:[%s452_s0 + $0x2a] sm:$0x3]  ;;  %49 = vst [vmem:[#allocation0 + $0xb8] sm:$0x3] %v275_v8  ;;  %54 = vst [vmem:[#allocation0 + $0xb0] sm:$0x3] %v276_v9 }
   0x8   :  { %59 = vst [vmem:[#allocation0 + $0xa8] sm:$0x3] %v277_v10  ;;  %v278_v11 = vld [vmem:[%s452_s0 + $0x28] sm:$0x3]  ;;  %v279_v12 = vld [vmem:[%s452_s0 + $0x26] sm:$0x3] }
   0x9   :  { %v280_v13 = vld [vmem:[%s452_s0 + $0x24] sm:$0x3]  ;;  %64 = vst [vmem:[#allocation0 + $0xa0] sm:$0x3] %v278_v11  ;;  %69 = vst [vmem:[#allocation0 + $0x98] sm:$0x3] %v279_v12 }
   0xa   :  { %74 = vst [vmem:[#allocation0 + $0x90] sm:$0x3] %v280_v13  ;;  %v281_v14 = vld [vmem:[%s452_s0 + $0x22] sm:$0x3]  ;;  %v282_v15 = vld [vmem:[%s452_s0 + $0x20] sm:$0x3] }
   0xb   :  { %v283_v16 = vld [vmem:[%s452_s0 + $0x1e] sm:$0x3]  ;;  %79 = vst [vmem:[#allocation0 + $0x88] sm:$0x3] %v281_v14  ;;  %84 = vst [vmem:[#allocation0 + $0x80] sm:$0x3] %v282_v15 }
   0xc   :  { %89 = vst [vmem:[#allocation0 + $0x78] sm:$0x3] %v283_v16  ;;  %v284_v17 = vld [vmem:[%s452_s0 + $0x1c] sm:$0x3]  ;;  %v285_v18 = vld [vmem:[%s452_s0 + $0x1a] sm:$0x3] }
   0xd   :  { %v286_v19 = vld [vmem:[%s452_s0 + $0x18] sm:$0x3]  ;;  %94 = vst [vmem:[#allocation0 + $0x70] sm:$0x3] %v284_v17  ;;  %99 = vst [vmem:[#allocation0 + $0x68] sm:$0x3] %v285_v18 }
   0xe   :  { %104 = vst [vmem:[#allocation0 + $0x60] sm:$0x3] %v286_v19  ;;  %v287_v20 = vld [vmem:[%s452_s0 + $0x16] sm:$0x3]  ;;  %v288_v21 = vld [vmem:[%s452_s0 + $0x14] sm:$0x3] }
   0xf   :  { %v289_v22 = vld [vmem:[%s452_s0 + $0x12] sm:$0x3]  ;;  %109 = vst [vmem:[#allocation0 + $0x58] sm:$0x3] %v287_v20  ;;  %114 = vst [vmem:[#allocation0 + $0x50] sm:$0x3] %v288_v21 }
  0x10   :  { %119 = vst [vmem:[#allocation0 + $0x48] sm:$0x3] %v289_v22  ;;  %v290_v23 = vld [vmem:[%s452_s0 + $0x10] sm:$0x3]  ;;  %v267_v24 = vld [vmem:[%s452_s0 + $0x3e] sm:$0x3] }
  0x11   :  { %v268_v25 = vld [vmem:[%s452_s0 + $0x3c] sm:$0x3]  ;;  %v197_v26 = vld [vmem:[#allocation0 + $0x1] ss:$8 sm:$0xf0]  }
  0x12   :  { %124 = vst [vmem:[#allocation0 + $0x40] sm:$0x3] %v290_v23  ;;  %9 = vst [vmem:[#allocation0 + $0xf8] sm:$0x3] %v267_v24  ;;  %v269_v27 = vld [vmem:[%s452_s0 + $0x3a] sm:$0x3] }
  0x13   :  { %14 = vst [vmem:[#allocation0 + $0xf0] sm:$0x3] %v268_v25  ;;  %v195_v28 = vld [vmem:[#allocation0 + $0x1] ss:$8 sm:$0xf]  }
  0x14   :  { %19 = vst [vmem:[#allocation0 + $0xe8] sm:$0x3] %v269_v27  ;;  %v270_v29 = vld [vmem:[%s452_s0 + $0x38] sm:$0x3]  ;;  %v199_v30 = vsel %vm163_vm0, %v197_v26, %v195_v28  ;;  %v271_v31 = vld [vmem:[%s452_s0 + $0x36] sm:$0x3] }
  0x15   :  { %24 = vst [vmem:[#allocation0 + $0xe0] sm:$0x3] %v270_v29  ;;  %v272_v32 = vld [vmem:[%s452_s0 + $0x34] sm:$0x3]  ;;  %v273_v33 = vld [vmem:[%s452_s0 + $0x32] sm:$0x3]  ;;  %200 = vrot.lane.b32.xlu0 %v199_v30, %s305_s10 }
  0x16   :  { %v218_v34 = vld [vmem:[#allocation0 + $0x81] ss:$8 sm:$0xf0]   ;;  %29 = vst [vmem:[#allocation0 + $0xd8] sm:$0x3] %v271_v31 }
  0x17   :  { %34 = vst [vmem:[#allocation0 + $0xd0] sm:$0x3] %v272_v32  ;;  %39 = vst [vmem:[#allocation0 + $0xc8] sm:$0x3] %v273_v33  ;;  %v274_v35 = vld [vmem:[%s452_s0 + $0x30] sm:$0x3] }
  0x18   :  { %v216_v36 = vld [vmem:[#allocation0 + $0x81] ss:$8 sm:$0xf]   ;;  %44 = vst [vmem:[#allocation0 + $0xc0] sm:$0x3] %v274_v35 }
  0x19   :  { %v161_v37 = vld [vmem:[#allocation0] ss:$8 sm:$0xf]   ;;  %v220_v38 = vsel %vm163_vm0, %v218_v34, %v216_v36  ;;  %v207_v39 = vld [vmem:[#allocation0 + $0x41] ss:$8 sm:$0xf0]  }
  0x1a   :  { %v162_v40 = vld [vmem:[#allocation0] ss:$8 sm:$0xf0]   ;;  %221 = vrot.lane.b32.xlu1 %v220_v38, %s305_s10  ;;  %v205_v44 = vld [vmem:[#allocation0 + $0x41] ss:$8 sm:$0xf]  }
  0x1b   :  { %v164_v41 = vsel %vm163_vm0, %v162_v40, %v161_v37  ;;  %v177_v42 = vld [vmem:[#allocation0 + $0x80] ss:$8 sm:$0xf]   ;;  %v209_v47 = vsel %vm163_vm0, %v207_v39, %v205_v44 }
  0x1c   :  { %v179_v43 = vld [vmem:[#allocation0 + $0x80] ss:$8 sm:$0xf0]   ;;  %166 = vst.msk [vmem:[%s453_s1] sm:$0xff] %vm165_vm1, %v164_v41   ;;  %210 = vrot.lane.b32.xlu0 %v209_v47, %s305_s10 }
  0x1d   :  { %v181_v45 = vsel %vm163_vm0, %v179_v43, %v177_v42  ;;  %v168_v46 = vld [vmem:[#allocation0 + $0x40] ss:$8 sm:$0xf]   ;;  %v229_v49 = vld [vmem:[#allocation0 + $0xc1] ss:$8 sm:$0xf0]  }
  0x1e   :  { %299 = vst.msk [vmem:[%s453_s1 + $0x10] sm:$0xff] %vm165_vm1, %v181_v45   ;;  %v170_v48 = vld [vmem:[#allocation0 + $0x40] ss:$8 sm:$0xf0]  }
  0x1f   :  { %v172_v50 = vsel %vm163_vm0, %v170_v48, %v168_v46  ;;  %v188_v51 = vld [vmem:[#allocation0 + $0xc0] ss:$8 sm:$0xf0]   ;;  %v227_v52 = vld [vmem:[#allocation0 + $0xc1] ss:$8 sm:$0xf]  }
  0x20   :  { %298 = vst.msk [vmem:[%s453_s1 + $0x8] sm:$0xff] %vm165_vm1, %v172_v50   ;;  %v186_v53 = vld [vmem:[#allocation0 + $0xc0] ss:$8 sm:$0xf]   ;;  %v231_v54 = vsel %vm163_vm0, %v229_v49, %v227_v52 }
  0x21   :  { %v190_v55 = vsel %vm163_vm0, %v188_v51, %v186_v53  ;;  %232 = vrot.lane.b32.xlu1 %v231_v54, %s305_s10 }
  0x22   :  { %300 = vst.msk [vmem:[%s453_s1 + $0x18] sm:$0xff] %vm165_vm1, %v190_v55  }
  0x87   :  { %v201_v56 = vpop.permute.xlu0 %200  }
  0x88   :  { %203 = vst.msk [vmem:[%s453_s1] sm:$0xff] %vm202_vm2, %v201_v56  }
  0x8c   :  { %v222_v57 = vpop.permute.xlu1 %221  }
  0x8d   :  { %302 = vst.msk [vmem:[%s453_s1 + $0x10] sm:$0xff] %vm202_vm2, %v222_v57  }
  0x8e   :  { %v211_v58 = vpop.permute.xlu0 %210  }
  0x8f   :  { %301 = vst.msk [vmem:[%s453_s1 + $0x8] sm:$0xff] %vm202_vm2, %v211_v58  }
  0x93   :  { %v233_v59 = vpop.permute.xlu1 %232  }
  0x94   :  { %303 = vst.msk [vmem:[%s453_s1 + $0x18] sm:$0xff] %vm202_vm2, %v233_v59  }

// kernel: _lambda_.3
= control target key start
LH: loop header
LB: loop body
LE: loop exit
PB: predicated region body
PF: predicated region fallthrough
CT: control target
= control target key end

     0   :  { %v2472_v0 = vmov 0.0   ;;  %v2473_v3 = vmov 0   ;;  %vm106_vm0 = vcmask 130048   ;;  %vm244_vm1 = vcmask 261120   ;;  %s2478_s24 = smov 20   ;;  %s2479_s26 = smov 10   ;;  %s4037_s0 = inlined_call_operand.vmem [shape: f32[144,98], index: 0, kind: input, shape index: {}]   ;;  %s4038_s3 = inlined_call_operand.vmem [shape: f32[32,144], index: 3, kind: input, shape index: {}]   ;;  %s4039_s4 = inlined_call_operand.vmem [shape: f32[32,1], index: 4, kind: input, shape index: {}]   ;;  %s4040_s6 = inlined_call_operand.vmem [shape: f32[32,1], index: 6, kind: input, shape index: {}]   ;;  %s4041_s5 = inlined_call_operand.vmem [shape: f32[32,32], index: 5, kind: input, shape index: {}]   ;;  %s4042_s1 = inlined_call_operand.vmem [shape: f32[32,98], index: 1, kind: input, shape index: {}]   ;;  %s4043_s7 = inlined_call_operand.vmem [shape: f32[10,32], index: 7, kind: input, shape index: {}]   ;;  %s4044_s17 = inlined_call_operand.vmem [shape: f32[10,98], index: 17, kind: output, shape index: {1}]   ;;  %s4045_s2 = inlined_call_operand.vmem [shape: f32[2,98], index: 2, kind: input, shape index: {}]   ;;  %s4046_s8 = inlined_call_operand.vmem [shape: f32[10,10], index: 8, kind: input, shape index: {}]   ;;  %s4047_s16 = inlined_call_operand.vmem [shape: f32[2,804], index: 16, kind: output, shape index: {0}]   ;;  %s4048_s10 = inlined_call_operand.vmem [shape: f32[10,10], index: 10, kind: input, shape index: {}]   ;;  %s4049_s12 = inlined_call_operand.vmem [shape: f32[10,400], index: 12, kind: input, shape index: {}]   ;;  %s4050_s14 = inlined_call_operand.vmem [shape: f32[400,784], index: 14, kind: input, shape index: {}]   ;;  %s4051_s18 = inlined_call_operand.vmem [shape: f32[2,10,32], index: 18, kind: output, shape index: {2}]   ;;  %s4052_s9 = inlined_call_operand.vmem [shape: f32[1,10], index: 9, kind: input, shape index: {}]   ;;  %s4053_s13 = inlined_call_operand.vmem [shape: f32[1,400], index: 13, kind: input, shape index: {}]   ;;  %s4054_s15 = inlined_call_operand.vmem [shape: f32[1,784], index: 15, kind: input, shape index: {}]   ;;  %s4055_s11 = inlined_call_operand.vmem [shape: f32[1,10], index: 11, kind: input, shape index: {}]  }
   0x1   :  { %4059 = sst [smem:[#allocation2_spill]] %s4037_s0  ;;  %119 = vmatprep.subr.mxu0 %v2472_v0  ;;  %2441 = vset.pattern.permute.xlu1 %v2473_v3  ;;  %v222_v16 = vld [vmem:[%s4040_s6 + $0x10] sm:$0xff]  ;;  %v223_v17 = vld [vmem:[%s4040_s6 + $0x18] sm:$0xff]  ;;  %v220_v20 = vld [vmem:[%s4040_s6] sm:$0xff]  ;;  %vm2475_vm2 = vmmov 0   ;;  %vm439_vm3 = vcmask 801792  }
   0x2   :  { %4060 = sst [smem:[#allocation3_spill]] %s4038_s3  ;;  %2440 = vset.pattern.permute.xlu0 %v2473_v3  ;;  %v221_v21 = vld [vmem:[%s4040_s6 + $0x8] sm:$0xff]  ;;  %v208_v36 = vld [vmem:[%s4041_s5] sm:$0xff]  ;;  %v215_v54 = vld [vmem:[%s4042_s1 + $0x18] sm:$0xff]  ;;  %vm441_vm4 = vcmask 795648   ;;  %vm600_vm5 = vcmask 400384  }
   0x3   :  { %4061 = sst [smem:[#allocation4_spill]] %s4039_s4  ;;  %2367 = vmatprep.mubr.msk.f32.mxu1 %vm244_vm1, %v208_v36  ;;  %v214_v57 = vld [vmem:[%s4042_s1 + $0x10] sm:$0xff]  ;;  %v213_v60 = vld [vmem:[%s4042_s1 + $0x8] sm:$0xff]  ;;  %v212_v62 = vld [vmem:[%s4042_s1] sm:$0xff]  ;;  %vm833_vm6 = vcmask 1041408   ;;  %vm829_vm7 = vcmask 80896  }
   0x4   :  { %s4062_s29 = sld [smem:[#allocation2_spill]]  ;;  %v210_v3 = vld [vmem:[%s4041_s5 + $0x10] sm:$0xff]  ;;  %vm2146_vm8 = vcmask 74752   ;;  %vm705_vm9 = vcmask 254976   ;;  %vm2213_vm10 = vcmask 1041568   ;;  %vm2214_vm11 = vcmask 1043458  }
   0x5   :  { %s4063_s25 = sld [smem:[#allocation3_spill]]  ;;  %vm2215_vm12 = vmor %vm2214_vm11, %vm2213_vm10  ;;  %vm2216_vm13 = vcmask 1045508   ;;  %vm2218_vm15 = vcmask 1047558  }
   0x6   :  { %s4064_s0 = sld [smem:[#allocation4_spill]]  ;;  %vm2217_vm14 = vmor %vm2216_vm13, %vm2215_vm12 }
   0xa   :  { %v79_v1 = vld [vmem:[%s4062_s29 + $0x78] sm:$0xff]  ;;  %v78_v2 = vld [vmem:[%s4062_s29 + $0x70] sm:$0xff]  ;;  %v77_v4 = vld [vmem:[%s4062_s29 + $0x68] sm:$0xff] }
   0xb   :  { %120 = vmatpush1.msra.mxu0 %v79_v1  ;;  %v76_v5 = vld [vmem:[%s4062_s29 + $0x60] sm:$0xff]  ;;  %v75_v6 = vld [vmem:[%s4062_s29 + $0x58] sm:$0xff]  ;;  %v57_v7 = vld [vmem:[%s4063_s25 + $0x8] sm:$0xff] }
   0xc   :  { %121 = vmatprep.subr.mxu0 %v2472_v0  ;;  %2237 = vmatprep.mubr.msk.f32.mxu0 %vm106_vm0, %v57_v7  ;;  %v74_v8 = vld [vmem:[%s4062_s29 + $0x50] sm:$0xff]  ;;  %v83_v9 = vld [vmem:[%s4064_s0 + $0x8] sm:$0xff]  ;;  %v85_v10 = vld [vmem:[%s4064_s0 + $0x18] sm:$0xff] }
   0xd   :  { %122 = vmatpush1.msra.mxu0 %v78_v2  ;;  %93 = vperm.xlu1 %2441, %v83_v9   ;;  %v73_v11 = vld [vmem:[%s4062_s29 + $0x48] sm:$0xff]  ;;  %v82_v12 = vld [vmem:[%s4064_s0] sm:$0xff]  ;;  %v84_v13 = vld [vmem:[%s4064_s0 + $0x10] sm:$0xff] }
   0xe   :  { %123 = vmatprep.subr.mxu0 %v2472_v0  ;;  %103 = vperm.xlu0 %2440, %v85_v10   ;;  %v72_v14 = vld [vmem:[%s4062_s29 + $0x40] sm:$0xff]  ;;  %v71_v15 = vld [vmem:[%s4062_s29 + $0x38] sm:$0xff]  ;;  %v70_v18 = vld [vmem:[%s4062_s29 + $0x30] sm:$0xff] }
   0xf   :  { %124 = vmatpush1.msra.mxu0 %v77_v4  ;;  %v69_v19 = vld [vmem:[%s4062_s29 + $0x28] sm:$0xff]  ;;  %v68_v22 = vld [vmem:[%s4062_s29 + $0x20] sm:$0xff]  ;;  %v67_v23 = vld [vmem:[%s4062_s29 + $0x18] sm:$0xff] }
  0x10   :  { %125 = vmatprep.subr.mxu0 %v2472_v0  ;;  %v66_v24 = vld [vmem:[%s4062_s29 + $0x10] sm:$0xff]  ;;  %v65_v25 = vld [vmem:[%s4062_s29 + $0x8] sm:$0xff]  ;;  %v64_v26 = vld [vmem:[%s4062_s29] sm:$0xff] }
  0x11   :  { %126 = vmatpush1.msra.mxu0 %v76_v5  ;;  %88 = vperm.xlu1 %2441, %v82_v12   ;;  %v81_v27 = vld [vmem:[%s4062_s29 + $0x88] sm:$0xff]  ;;  %v80_v28 = vld [vmem:[%s4062_s29 + $0x80] sm:$0xff]  ;;  %v59_v30 = vld [vmem:[%s4063_s25 + $0x18] sm:$0xff] }
  0x12   :  { %127 = vmatprep.subr.mxu0 %v2472_v0  ;;  %98 = vperm.xlu0 %2440, %v84_v13   ;;  %v56_v29 = vld [vmem:[%s4063_s25] sm:$0xff]  ;;  %v58_v31 = vld [vmem:[%s4063_s25 + $0x10] sm:$0xff]  ;;  %v61_v32 = vld [vmem:[%s4063_s25 + $0x28] sm:$0xff] }
  0x13   :  { %128 = vmatpush1.msra.mxu0 %v75_v6  ;;  %v60_v33 = vld [vmem:[%s4063_s25 + $0x20] sm:$0xff]  ;;  %v63_v34 = vld [vmem:[%s4063_s25 + $0x38] sm:$0xff]  ;;  %v62_v35 = vld [vmem:[%s4063_s25 + $0x30] sm:$0xff]  ;;  %s2474_s25 = smov 79  }
  0x14   :  { %129 = vmatprep.subr.mxu0 %v2472_v0  ;;  %v209_v2 = vld [vmem:[%s4041_s5 + $0x8] sm:$0xff]  ;;  %v211_v4 = vld [vmem:[%s4041_s5 + $0x18] sm:$0xff]  ;;  %v342_v5 = vld [vmem:[%s4043_s7] sm:$0xff] }
  0x15   :  { %130 = vmatpush1.msra.mxu0 %v74_v8  ;;  %236 = vperm.xlu1 %2441, %v222_v16  }
  0x16   :  { %131 = vmatprep.subr.mxu0 %v2472_v0  ;;  %241 = vperm.xlu0 %2440, %v223_v17  }
  0x17   :  { %132 = vmatpush1.msra.mxu0 %v73_v11 }
  0x18   :  { %133 = vmatprep.subr.mxu0 %v2472_v0 }
  0x19   :  { %134 = vmatpush1.msra.mxu0 %v72_v14  ;;  %226 = vperm.xlu1 %2441, %v220_v20  }
  0x1a   :  { %135 = vmatprep.subr.mxu0 %v2472_v0  ;;  %231 = vperm.xlu0 %2440, %v221_v21  }
  0x1b   :  { %136 = vmatpush1.msra.mxu0 %v71_v15 }
  0x1c   :  { %137 = vmatprep.subr.mxu0 %v2472_v0 }
  0x1d   :  { %138 = vmatpush1.msra.mxu0 %v70_v18  ;;  %v343_v18 = vld [vmem:[%s4043_s7 + $0x8] sm:$0x3] }
  0x1e   :  { %139 = vmatprep.subr.mxu0 %v2472_v0 }
  0x1f   :  { %140 = vmatpush1.msra.mxu0 %v69_v19 }
  0x20   :  { %141 = vmatprep.subr.mxu0 %v2472_v0 }
  0x21   :  { %142 = vmatpush1.msra.mxu0 %v68_v22 }
  0x22   :  { %143 = vmatprep.subr.mxu0 %v2472_v0 }
  0x23   :  { %144 = vmatpush1.msra.mxu0 %v67_v23 }
  0x24   :  { %145 = vmatprep.subr.mxu0 %v2472_v0 }
  0x25   :  { %146 = vmatpush1.msra.mxu0 %v66_v24 }
  0x26   :  { %147 = vmatprep.subr.mxu0 %v2472_v0 }
  0x27   :  { %148 = vmatpush1.msra.mxu0 %v65_v25 }
  0x28   :  { %149 = vmatprep.subr.mxu0 %v2472_v0 }
  0x29   :  { %150 = vmatpush1.msra.mxu0 %v64_v26 }
  0x2a   :  { %179 = vmatprep.subr.mxu0 %v2472_v0 }
  0x2b   :  { %180 = vmatpush2.msra.mxu0 %v81_v27 }
  0x2c   :  { %181 = vmatprep.subr.mxu0 %v2472_v0 }
  0x2d   :  { %182 = vmatpush2.msra.mxu0 %v80_v28 }
  0x2e   :  { %184 = vmatmul.mubr.f32.vlgmr.msra.gmra.mxu0 %v56_v29 }
  0x2f   :  { %2238 = vmatprep.mubr.msk.f32.mxu0 %vm106_vm0, %v59_v30 }
  0x32   :  { %189 = vmatmul.mubr.f32.gmra.mxu0 %v58_v31  ;;  %v443_v31 = vld [vmem:[%s4045_s2] sm:$0x3] }
  0x33   :  { %2239 = vmatprep.mubr.msk.f32.mxu0 %vm106_vm0, %v61_v32 }
  0x36   :  { %194 = vmatmul.mubr.f32.gmra.mxu0 %v60_v33 }
  0x37   :  { %2240 = vmatprep.mubr.msk.f32.mxu0 %vm106_vm0, %v63_v34 }
  0x3a   :  { %199 = vmatmul.mubr.f32.gmra.mxu0 %v62_v35 }
  0x88   :  { %v94_v38 = vpop.permute.xlu1 %93 }
  0x89   :  { %v104_v39 = vpop.permute.xlu0 %103 }
  0x8c   :  { %v89_v43 = vpop.permute.xlu1 %88 }
  0x8d   :  { %v99_v44 = vpop.permute.xlu0 %98 }
  0x90   :  { %v237_v9 = vpop.permute.xlu1 %236 }
  0x91   :  { %v242_v7 = vpop.permute.xlu0 %241 }
  0x94   :  { %v227_v16 = vpop.permute.xlu1 %226 }
  0x95   :  { %v232_v14 = vpop.permute.xlu0 %231 }
  0xee   :  { %v185_v37 = vpop.f32.mrf.mxu0 }
  0xef   :  { %v186_v48 = vadd.f32 %v185_v37, %v89_v43  ;;  %v821_v37 = vld [vmem:[%s4046_s8 + $0x8] sm:$0x3] }
  0xf0   :  { %v187_v40 = vpop.f32.mrf.mxu0 }
  0xf1   :  { %v2710_v55 = vmax.f32 %v186_v48, 0.0 }
  0xf2   :  { %v190_v41 = vpop.f32.mrf.mxu0 }
  0xf3   :  { %v191_v51 = vadd.f32 %v190_v41, %v94_v38  ;;  %v216_v1 = vadd.f32 %v212_v62, %v2710_v55  ;;  %v1265_v62 = vld [vmem:[%s4050_s14 + $0x2a0] sm:$0xff] }
  0xf4   :  { %v192_v42 = vpop.f32.mrf.mxu0 }
  0xf5   :  { %v2717_v58 = vmax.f32 %v191_v51, 0.0  ;;  %v2476_v51 = vmov 1  }
  0xf6   :  { %v195_v45 = vpop.f32.mrf.mxu0 }
  0xf7   :  { %v196_v46 = vadd.f32 %v195_v45, %v99_v44  ;;  %v217_v63 = vadd.f32 %v213_v60, %v2717_v58  ;;  %v1272_v60 = vld [vmem:[%s4050_s14 + $0x2d8] sm:$0xff] }
  0xf8   :  { %v197_v47 = vpop.f32.mrf.mxu0 }
  0xf9   :  { %v2703_v49 = vmax.f32 %v196_v46, 0.0 }
  0xfa   :  { %v200_v50 = vpop.f32.mrf.mxu0 }
  0xfb   :  { %v201_v52 = vadd.f32 %v200_v50, %v104_v39  ;;  %715 = vrot.lane.b32.xlu1 %v2703_v49, %s2474_s25  ;;  %v218_v61 = vadd.f32 %v214_v57, %v2703_v49  ;;  %v820_v39 = vld [vmem:[%s4046_s8] sm:$0xff]  ;;  %v1280_v57 = vld [vmem:[%s4050_s14 + $0x318] sm:$0xff] }
  0xfc   :  { %v202_v53 = vpop.f32.mrf.mxu0 }
  0xfd   :  { %v2712_v56 = vmax.f32 %v201_v52, 0.0  ;;  %v909_v52 = vld [vmem:[%s4048_s10 + $0x8] sm:$0x3]  ;;  %v908_v53 = vld [vmem:[%s4048_s10] sm:$0xff] }
  0xff   :  { %717 = vrot.lane.b32.xlu0 %v2712_v56, %s2474_s25  ;;  %711 = vrot.lane.b32.xlu1 %v2710_v55, %s2474_s25  ;;  %v219_v59 = vadd.f32 %v215_v54, %v2712_v56  ;;  %v998_v54 = vld [vmem:[%s4049_s12 + $0x28] sm:$0x3] }
 0x101   :  { %2359 = vmatprep.subr.mxu1 %v219_v59 }
 0x102   :  { %2360 = vmatpush3.msra.mxu1 %v219_v59  ;;  %v1273_v59 = vld [vmem:[%s4050_s14 + $0x2e0] sm:$0xff] }
 0x103   :  { %2361 = vmatprep.subr.mxu1 %v218_v61  ;;  %713 = vrot.lane.b32.xlu0 %v2717_v58, %s2474_s25 }
 0x104   :  { %2362 = vmatpush3.msra.mxu1 %v218_v61  ;;  %v1266_v61 = vld [vmem:[%s4050_s14 + $0x2a8] sm:$0xff] }
 0x105   :  { %2363 = vmatprep.subr.mxu1 %v217_v63 }
 0x106   :  { %2364 = vmatpush3.msra.mxu1 %v217_v63  ;;  %v1259_v63 = vld [vmem:[%s4050_s14 + $0x270] sm:$0xff] }
 0x107   :  { %2365 = vmatprep.subr.mxu1 %v216_v1 }
 0x108   :  { %2366 = vmatpush3.msra.mxu1 %v216_v1  ;;  %v1258_v1 = vld [vmem:[%s4050_s14 + $0x268] sm:$0xff] }
 0x109   :  { %2368 = vmatmul.mubr.msk.f32.vlgmr.msra.gmra.mxu1 %vm244_vm1, %v209_v2  ;;  %v1252_v2 = vld [vmem:[%s4050_s14 + $0x238] sm:$0xff] }
 0x10a   :  { %2370 = vmatprep.mubr.msk.f32.mxu1 %vm244_vm1, %v210_v3  ;;  %v1251_v3 = vld [vmem:[%s4050_s14 + $0x230] sm:$0xff] }
 0x10d   :  { %2371 = vmatmul.mubr.msk.f32.gmra.mxu1 %vm244_vm1, %v211_v4  ;;  %v1245_v4 = vld [vmem:[%s4050_s14 + $0x200] sm:$0xff] }
 0x10e   :  { %2381 = vmatprep.mubr.msk.f32.mxu1 %vm244_vm1, %v342_v5  ;;  %v1244_v5 = vld [vmem:[%s4050_s14 + $0x1f8] sm:$0xff] }
 0x16d   :  { %v716_v33 = vpop.permute.xlu1 %715 }
 0x171   :  { %v718_v32 = vpop.permute.xlu0 %717  ;;  %v712_v35 = vpop.permute.xlu1 %711 }
 0x175   :  { %v714_v34 = vpop.permute.xlu0 %713 }
 0x1c9   :  { %v2369_v6 = vpop.f32.mrf.mxu1 }
 0x1ca   :  { %v329_v15 = vadd.f32 %v2369_v6, %v232_v14  ;;  %v1238_v6 = vld [vmem:[%s4050_s14 + $0x1c8] sm:$0xff] }
 0x1cb   :  { %v323_v8 = vpop.f32.mrf.mxu1  ;;  %v1210_v14 = vld [vmem:[%s4050_s14 + $0xe8] sm:$0xff] }
 0x1cc   :  { %v324_v17 = vadd.f32 %v323_v8, %v227_v16  ;;  %v1231_v8 = vld [vmem:[%s4050_s14 + $0x190] sm:$0xff] }
 0x1cd   :  { %v2372_v10 = vpop.f32.mrf.mxu1  ;;  %v1203_v16 = vld [vmem:[%s4050_s14 + $0xb0] sm:$0xff] }
 0x1ce   :  { %v339_v11 = vadd.f32 %v2372_v10, %v242_v7  ;;  %v1237_v7 = vld [vmem:[%s4050_s14 + $0x1c0] sm:$0xff]  ;;  %v1224_v10 = vld [vmem:[%s4050_s14 + $0x158] sm:$0xff] }
 0x1cf   :  { %v333_v12 = vpop.f32.mrf.mxu1 }
 0x1d0   :  { %v334_v13 = vadd.f32 %v333_v12, %v237_v9  ;;  %2373 = vmatprep.subr.mxu1 %v339_v11  ;;  %v1230_v9 = vld [vmem:[%s4050_s14 + $0x188] sm:$0xff]  ;;  %v1217_v12 = vld [vmem:[%s4050_s14 + $0x120] sm:$0xff] }
 0x1d1   :  { %2374 = vmatpush3.msra.mxu1 %v339_v11  ;;  %v1223_v11 = vld [vmem:[%s4050_s14 + $0x150] sm:$0xff] }
 0x1d2   :  { %2375 = vmatprep.subr.mxu1 %v334_v13 }
 0x1d3   :  { %2376 = vmatpush3.msra.mxu1 %v334_v13  ;;  %v1216_v13 = vld [vmem:[%s4050_s14 + $0x118] sm:$0xff] }
 0x1d4   :  { %2377 = vmatprep.subr.mxu1 %v329_v15 }
 0x1d5   :  { %2378 = vmatpush3.msra.mxu1 %v329_v15  ;;  %v1209_v15 = vld [vmem:[%s4050_s14 + $0xe0] sm:$0xff] }
 0x1d6   :  { %2379 = vmatprep.subr.mxu1 %v324_v17 }
 0x1d7   :  { %2380 = vmatpush3.msra.mxu1 %v324_v17  ;;  %v1202_v17 = vld [vmem:[%s4050_s14 + $0xa8] sm:$0xff] }
 0x1d8   :  { %2382 = vmatmul.mubr.msk.f32.vlgmr.msra.gmra.mxu1 %vm244_vm1, %v343_v18  ;;  %2384 = vmatprep.subr.mxu1 %v2472_v0  ;;  %v1196_v18 = vld [vmem:[%s4050_s14 + $0x78] sm:$0xff] }
 0x1d9   :  { %2388 = vmatprep.mubr.msk.f32.mxu1 %vm2475_vm2, %v2472_v0 }
 0x298   :  { %v2383_v19 = vpop.f32.mrf.mxu1 }
 0x299   :  { %v2248_v20 = vmul.f32 -0.17677669, %v2383_v19  ;;  %v1195_v19 = vld [vmem:[%s4050_s14 + $0x70] sm:$0xff] }
 0x29a   :  { %v416_v21 = vpop.f32.mrf.mxu1 }
 0x29b   :  { %v431_v22 = vmul.f32 1.442695, %v2248_v20  ;;  %v2247_v23 = vmul.f32 -0.17677669, %v416_v21  ;;  %v1189_v20 = vld [vmem:[%s4050_s14 + $0x40] sm:$0xff]  ;;  %v1188_v21 = vld [vmem:[%s4050_s14 + $0x38] sm:$0xff] }
 0x29d   :  { %2444 = vpow2.f32 %v431_v22  ;;  %v429_v24 = vmul.f32 1.442695, %v2247_v23  ;;  %v1182_v22 = vld [vmem:[%s4050_s14 + $0x8] sm:$0xff]  ;;  %v1181_v23 = vld [vmem:[%s4050_s14] sm:$0xff] }
 0x29f   :  { %2446 = vpow2.f32 %v429_v24  ;;  %v1399_v24 = vld [vmem:[%s4050_s14 + $0x6d0] sm:$0xff] }
 0x2aa   :  { %v2445_v25 = vpop.eup %2444 }
 0x2ab   :  { %v434_v26 = vadd.f32 1.0, %v2445_v25  ;;  %v1398_v25 = vld [vmem:[%s4050_s14 + $0x6c8] sm:$0xff] }
 0x2ac   :  { %v2447_v27 = vpop.eup %2446 }
 0x2ad   :  { %2448 = vrcp.f32 %v434_v26  ;;  %v433_v28 = vadd.f32 1.0, %v2447_v27  ;;  %v1392_v26 = vld [vmem:[%s4050_s14 + $0x698] sm:$0xff]  ;;  %v1391_v27 = vld [vmem:[%s4050_s14 + $0x690] sm:$0xff] }
 0x2af   :  { %2450 = vrcp.f32 %v433_v28  ;;  %v1385_v28 = vld [vmem:[%s4050_s14 + $0x660] sm:$0xff] }
 0x2ba   :  { %v2449_v29 = vpop.eup %2448 }
 0x2bb   :  { %442 = vst.msk [vmem:[%s4044_s17 + $0x8] sm:$0x3] %vm441_vm4, %v2449_v29  ;;  %2385 = vmatpush3.xpose.msk.msra.mxu1 %vm439_vm3, %v2449_v29  ;;  %709 = vrot.lane.b32.xlu1 %v2449_v29, %s2474_s25  ;;  %vm2222_vm4 = vcmask 291844  }
 0x2bc   :  { %v2451_v30 = vpop.eup %2450  ;;  %2386 = vmatprep.subr.mxu1 %v2472_v0 }
 0x2bd   :  { %440 = vst.msk [vmem:[%s4044_s17] sm:$0xff] %vm439_vm3, %v2451_v30  ;;  %707 = vrot.lane.b32.xlu0 %v2451_v30, %s2474_s25 }
 0x2bf   :  { %2387 = vmatpush3.xpose.msk.msra.mxu1 %vm439_vm3, %v2451_v30 }
 0x2c0   :  { %2391 = vmatprep.subr.msk.mxu1 %vm439_vm3, %v443_v31 }
 0x2c2   :  { %2389 = vmatmul.mubr.msk.f32.vlgmr.msra.gmra.mxu1 %vm439_vm3, %v443_v31 }
 0x2c3   :  { %2392 = vmatpush3.xpose.msk.msra.mxu1 %vm439_vm3, %v443_v31  ;;  %2393 = vmatprep.mubr.msk.f32.mxu1 %vm439_vm3, %v2451_v30  ;;  %v1377_v31 = vld [vmem:[%s4050_s14 + $0x620] sm:$0xff] }
 0x2c4   :  { %2396 = vmatprep.subr.msk.mxu1 %vm600_vm5, %v2712_v56 }
 0x2c6   :  { %2394 = vmatmul.mubr.msk.f32.vlgmr.msra.gmra.mxu1 %vm439_vm3, %v2449_v29  ;;  %vm2221_vm3 = vmor %vm2214_vm11, %vm833_vm6 }
 0x2c7   :  { %2397 = vmatpush3.xpose.msk.msra.mxu1 %vm600_vm5, %v2712_v56  ;;  %2404 = vmatprep.mubr.msk.f32.mxu1 %vm600_vm5, %v2451_v30  ;;  %v1286_v56 = vld [vmem:[%s4050_s14 + $0x348] sm:$0xff] }
 0x2c8   :  { %2398 = vmatprep.subr.msk.mxu1 %vm600_vm5, %v2703_v49  ;;  %v1378_v30 = vld [vmem:[%s4050_s14 + $0x628] sm:$0xff] }
 0x2cb   :  { %2399 = vmatpush3.xpose.msk.msra.mxu1 %vm600_vm5, %v2703_v49 }
 0x2cc   :  { %2400 = vmatprep.subr.msk.mxu1 %vm600_vm5, %v2717_v58 }
 0x2cf   :  { %2401 = vmatpush3.xpose.msk.msra.mxu1 %vm600_vm5, %v2717_v58  ;;  %v1279_v58 = vld [vmem:[%s4050_s14 + $0x310] sm:$0xff] }
 0x2d0   :  { %2402 = vmatprep.subr.msk.mxu1 %vm600_vm5, %v2710_v55 }
 0x2d3   :  { %2403 = vmatpush3.xpose.msk.msra.mxu1 %vm600_vm5, %v2710_v55  ;;  %v1287_v55 = vld [vmem:[%s4050_s14 + $0x350] sm:$0xff] }
 0x2d4   :  { %2407 = vmatprep.subr.msk.mxu1 %vm600_vm5, %v718_v32  ;;  %1571 = vmatprep.subr.mxu0 %v1287_v55 }
 0x2d5   :  { %1572 = vmatpush1.msra.mxu0 %v1286_v56 }
 0x2d6   :  { %2405 = vmatmul.mubr.msk.f32.vlgmr.msra.gmra.mxu1 %vm600_vm5, %v2449_v29  ;;  %1573 = vmatprep.subr.mxu0 %v1280_v57  ;;  %v1384_v29 = vld [vmem:[%s4050_s14 + $0x658] sm:$0xff] }
 0x2d7   :  { %2408 = vmatpush3.xpose.msk.msra.mxu1 %vm600_vm5, %v718_v32  ;;  %1574 = vmatpush1.msra.mxu0 %v1279_v58  ;;  %v1371_v32 = vld [vmem:[%s4050_s14 + $0x5f0] sm:$0xff]  ;;  %v2269_v58 = vld [vmem:[%s4052_s9] ss:$0 sm:$0xff] }
 0x2d8   :  { %2409 = vmatprep.subr.msk.mxu1 %vm600_vm5, %v716_v33  ;;  %1575 = vmatprep.subr.mxu0 %v1273_v59 }
 0x2d9   :  { %1576 = vmatpush1.msra.mxu0 %v1272_v60 }
 0x2da   :  { %1577 = vmatprep.subr.mxu0 %v1266_v61 }
 0x2db   :  { %2410 = vmatpush3.xpose.msk.msra.mxu1 %vm600_vm5, %v716_v33  ;;  %1578 = vmatpush1.msra.mxu0 %v1265_v62  ;;  %v1370_v33 = vld [vmem:[%s4050_s14 + $0x5e8] sm:$0xff] }
 0x2dc   :  { %2411 = vmatprep.subr.msk.mxu1 %vm600_vm5, %v714_v34  ;;  %1579 = vmatprep.subr.mxu0 %v1259_v63  ;;  %v997_v63 = vld [vmem:[%s4049_s12 + $0x20] sm:$0x3] }
 0x2dd   :  { %1580 = vmatpush1.msra.mxu0 %v1258_v1  ;;  %v994_v1 = vld [vmem:[%s4049_s12 + $0x8] sm:$0xff] }
 0x2de   :  { %1581 = vmatprep.subr.mxu0 %v1252_v2  ;;  %v993_v2 = vld [vmem:[%s4049_s12] sm:$0xff] }
 0x2df   :  { %2412 = vmatpush3.xpose.msk.msra.mxu1 %vm600_vm5, %v714_v34  ;;  %1582 = vmatpush1.msra.mxu0 %v1251_v3  ;;  %v1364_v34 = vld [vmem:[%s4050_s14 + $0x5b8] sm:$0xff] }
 0x2e0   :  { %2413 = vmatprep.subr.msk.mxu1 %vm600_vm5, %v712_v35  ;;  %1583 = vmatprep.subr.mxu0 %v1245_v4  ;;  %v1000_v3 = vld [vmem:[%s4049_s12 + $0x38] sm:$0x3]  ;;  %v999_v4 = vld [vmem:[%s4049_s12 + $0x30] sm:$0x3] }
 0x2e1   :  { %1584 = vmatpush1.msra.mxu0 %v1244_v5  ;;  %v996_v5 = vld [vmem:[%s4049_s12 + $0x18] sm:$0xff] }
 0x2e2   :  { %1585 = vmatprep.subr.mxu0 %v1238_v6  ;;  %v995_v6 = vld [vmem:[%s4049_s12 + $0x10] sm:$0xff] }
 0x2e3   :  { %2414 = vmatpush3.xpose.msk.msra.mxu1 %vm600_vm5, %v712_v35  ;;  %1586 = vmatpush1.msra.mxu0 %v1237_v7  ;;  %v1363_v35 = vld [vmem:[%s4050_s14 + $0x5b0] sm:$0xff] }
 0x2e4   :  { %2418 = vmatprep.subr.mxu1 %v2472_v0  ;;  %1587 = vmatprep.subr.mxu0 %v1231_v8  ;;  %v1511_v7 = vld [vmem:[%s4050_s14 + $0xa50] sm:$0xff]  ;;  %v1510_v8 = vld [vmem:[%s4050_s14 + $0xa48] sm:$0xff] }
 0x2e5   :  { %1588 = vmatpush1.msra.mxu0 %v1230_v9  ;;  %v1504_v9 = vld [vmem:[%s4050_s14 + $0xa18] sm:$0xff] }
 0x2e6   :  { %1589 = vmatprep.subr.mxu0 %v1224_v10  ;;  %v1503_v10 = vld [vmem:[%s4050_s14 + $0xa10] sm:$0xff] }
 0x2e7   :  { %1590 = vmatpush1.msra.mxu0 %v1223_v11  ;;  %v1497_v11 = vld [vmem:[%s4050_s14 + $0x9e0] sm:$0xff] }
 0x2e8   :  { %1591 = vmatprep.subr.mxu0 %v1217_v12  ;;  %v1496_v12 = vld [vmem:[%s4050_s14 + $0x9d8] sm:$0xff] }
 0x2e9   :  { %1592 = vmatpush1.msra.mxu0 %v1216_v13  ;;  %v1489_v13 = vld [vmem:[%s4050_s14 + $0x9a0] sm:$0xff] }
 0x2ea   :  { %1593 = vmatprep.subr.mxu0 %v1210_v14  ;;  %v1483_v14 = vld [vmem:[%s4050_s14 + $0x970] sm:$0xff] }
 0x2eb   :  { %1594 = vmatpush1.msra.mxu0 %v1209_v15  ;;  %v1482_v15 = vld [vmem:[%s4050_s14 + $0x968] sm:$0xff] }
 0x2ec   :  { %1595 = vmatprep.subr.mxu0 %v1203_v16  ;;  %v1476_v16 = vld [vmem:[%s4050_s14 + $0x938] sm:$0xff] }
 0x2ed   :  { %1596 = vmatpush1.msra.mxu0 %v1202_v17  ;;  %v1475_v17 = vld [vmem:[%s4050_s14 + $0x930] sm:$0xff] }
 0x2ee   :  { %1597 = vmatprep.subr.mxu0 %v1196_v18  ;;  %v1469_v18 = vld [vmem:[%s4050_s14 + $0x900] sm:$0xff] }
 0x2ef   :  { %1598 = vmatpush1.msra.mxu0 %v1195_v19  ;;  %v1468_v19 = vld [vmem:[%s4050_s14 + $0x8f8] sm:$0xff] }
 0x2f0   :  { %1599 = vmatprep.subr.mxu0 %v1189_v20  ;;  %v1462_v20 = vld [vmem:[%s4050_s14 + $0x8c8] sm:$0xff] }
 0x2f1   :  { %1600 = vmatpush1.msra.mxu0 %v1188_v21  ;;  %v1461_v21 = vld [vmem:[%s4050_s14 + $0x8c0] sm:$0xff] }
 0x2f2   :  { %1601 = vmatprep.subr.mxu0 %v1182_v22  ;;  %v1455_v22 = vld [vmem:[%s4050_s14 + $0x890] sm:$0xff] }
 0x2f3   :  { %1602 = vmatpush1.msra.mxu0 %v1181_v23  ;;  %v1454_v23 = vld [vmem:[%s4050_s14 + $0x888] sm:$0xff] }
 0x2f4   :  { %1603 = vmatprep.subr.mxu0 %v1399_v24  ;;  %v1448_v24 = vld [vmem:[%s4050_s14 + $0x858] sm:$0xff] }
 0x2f5   :  { %1604 = vmatpush2.msra.mxu0 %v1398_v25  ;;  %v1447_v25 = vld [vmem:[%s4050_s14 + $0x850] sm:$0xff] }
 0x2f6   :  { %1605 = vmatprep.subr.mxu0 %v1392_v26  ;;  %v1441_v26 = vld [vmem:[%s4050_s14 + $0x820] sm:$0xff] }
 0x2f7   :  { %1606 = vmatpush2.msra.mxu0 %v1391_v27  ;;  %v1328_v27 = vld [vmem:[%s4050_s14 + $0x498] sm:$0xff] }
 0x2f8   :  { %1607 = vmatprep.subr.mxu0 %v1385_v28  ;;  %v1440_v28 = vld [vmem:[%s4050_s14 + $0x818] sm:$0xff] }
 0x2f9   :  { %1608 = vmatpush2.msra.mxu0 %v1384_v29  ;;  %v1322_v29 = vld [vmem:[%s4050_s14 + $0x468] sm:$0xff] }
 0x2fa   :  { %1609 = vmatprep.subr.mxu0 %v1378_v30  ;;  %v1434_v30 = vld [vmem:[%s4050_s14 + $0x7e8] sm:$0xff] }
 0x2fb   :  { %1610 = vmatpush2.msra.mxu0 %v1377_v31  ;;  %v1321_v31 = vld [vmem:[%s4050_s14 + $0x460] sm:$0xff] }
 0x2fc   :  { %1611 = vmatprep.subr.mxu0 %v1371_v32  ;;  %v1433_v32 = vld [vmem:[%s4050_s14 + $0x7e0] sm:$0xff] }
 0x2fd   :  { %1612 = vmatpush2.msra.mxu0 %v1370_v33  ;;  %v1315_v33 = vld [vmem:[%s4050_s14 + $0x430] sm:$0xff] }
 0x2fe   :  { %1613 = vmatprep.subr.mxu0 %v1364_v34  ;;  %v1427_v34 = vld [vmem:[%s4050_s14 + $0x7b0] sm:$0xff] }
 0x2ff   :  { %1614 = vmatpush2.msra.mxu0 %v1363_v35  ;;  %v1314_v35 = vld [vmem:[%s4050_s14 + $0x428] sm:$0xff] }
 0x32d   :  { %v710_v38 = vpop.permute.xlu1 %709 }
 0x32f   :  { %v708_v36 = vpop.permute.xlu0 %707 }
 0x330   :  { %2415 = vmatprep.mubr.msk.f32.mxu1 %vm600_vm5, %v708_v36  ;;  %v1357_v36 = vld [vmem:[%s4050_s14 + $0x580] sm:$0xff] }
 0x331   :  { %2416 = vmatmul.mubr.msk.f32.vlgmr.msra.gmra.mxu1 %vm600_vm5, %v710_v38  ;;  %v1350_v38 = vld [vmem:[%s4050_s14 + $0x548] sm:$0xff]  ;;  %1615 = vmatprep.subr.mxu0 %v1357_v36  ;;  %vm2223_vm5 = vmor %vm2222_vm4, %vm2221_vm3 }
 0x332   :  { %2419 = vmatpush3.msk.msra.mxu1 %vm833_vm6, %v821_v37  ;;  %2422 = vmatprep.mubr.msk.f32.mxu1 %vm2475_vm2, %v2472_v0  ;;  %v1356_v37 = vld [vmem:[%s4050_s14 + $0x578] sm:$0xff]  ;;  %v1426_v36 = vld [vmem:[%s4050_s14 + $0x7a8] sm:$0xff] }
 0x333   :  { %2420 = vmatprep.subr.mxu1 %v2472_v0  ;;  %1616 = vmatpush2.msra.mxu0 %v1356_v37  ;;  %v1308_v37 = vld [vmem:[%s4050_s14 + $0x3f8] sm:$0xff] }
 0x334   :  { %2421 = vmatpush3.msra.mxu1 %v820_v39  ;;  %v1349_v39 = vld [vmem:[%s4050_s14 + $0x540] sm:$0xff]  ;;  %1617 = vmatprep.subr.mxu0 %v1350_v38  ;;  %v1420_v38 = vld [vmem:[%s4050_s14 + $0x778] sm:$0xff] }
 0x335   :  { %2425 = vmatprep.subr.mxu1 %v2472_v0  ;;  %1618 = vmatpush2.msra.mxu0 %v1349_v39  ;;  %v1307_v39 = vld [vmem:[%s4050_s14 + $0x3f0] sm:$0xff] }
 0x382   :  { %v519_v40 = vpop.f32.mrf.mxu1 }
 0x383   :  { %2452 = vtanh.f32 %v519_v40  ;;  %v1343_v40 = vld [vmem:[%s4050_s14 + $0x510] sm:$0xff] }
 0x384   :  { %v2390_v41 = vpop.f32.mrf.mxu1  ;;  %1619 = vmatprep.subr.mxu0 %v1343_v40  ;;  %v1419_v40 = vld [vmem:[%s4050_s14 + $0x770] sm:$0xff] }
 0x385   :  { %v1342_v41 = vld [vmem:[%s4050_s14 + $0x508] sm:$0xff] }
 0x386   :  { %v2395_v42 = vpop.f32.mrf.mxu1  ;;  %1620 = vmatpush2.msra.mxu0 %v1342_v41  ;;  %v1301_v41 = vld [vmem:[%s4050_s14 + $0x3c0] sm:$0xff] }
 0x387   :  { %v595_v43 = vadd.f32 1e-06, %v2395_v42 }
 0x388   :  { %v589_v44 = vpop.f32.mrf.mxu1 }
 0x389   :  { %2454 = vrcp.f32 %v595_v43  ;;  %v590_v45 = vadd.f32 1e-06, %v589_v44  ;;  %v1336_v43 = vld [vmem:[%s4050_s14 + $0x4d8] sm:$0xff]  ;;  %v1335_v44 = vld [vmem:[%s4050_s14 + $0x4d0] sm:$0xff] }
 0x38a   :  { %1621 = vmatprep.subr.mxu0 %v1336_v43  ;;  %v1300_v43 = vld [vmem:[%s4050_s14 + $0x3b8] sm:$0xff] }
 0x38b   :  { %2456 = vrcp.f32 %v590_v45  ;;  %v1329_v45 = vld [vmem:[%s4050_s14 + $0x4a0] sm:$0xff]  ;;  %1622 = vmatpush2.msra.mxu0 %v1335_v44  ;;  %v1412_v44 = vld [vmem:[%s4050_s14 + $0x738] sm:$0xff] }
 0x38c   :  { %1623 = vmatprep.subr.mxu0 %v1329_v45  ;;  %v1294_v45 = vld [vmem:[%s4050_s14 + $0x388] sm:$0xff] }
 0x38d   :  { %1624 = vmatpush2.msra.mxu0 %v1328_v27  ;;  %v1275_v27 = vld [vmem:[%s4050_s14 + $0x2f0] sm:$0xff] }
 0x38e   :  { %1625 = vmatprep.subr.mxu0 %v1322_v29  ;;  %v1274_v29 = vld [vmem:[%s4050_s14 + $0x2e8] sm:$0xff] }
 0x38f   :  { %1626 = vmatpush2.msra.mxu0 %v1321_v31  ;;  %v1268_v31 = vld [vmem:[%s4050_s14 + $0x2b8] sm:$0xff] }
 0x390   :  { %v2818_v46 = vpop.eup %2452  ;;  %1627 = vmatprep.subr.mxu0 %v1315_v33  ;;  %v1267_v33 = vld [vmem:[%s4050_s14 + $0x2b0] sm:$0xff] }
 0x391   :  { %2423 = vmatmul.mubr.msk.f32.vlgmr.msra.gmra.mxu1 %vm829_vm7, %v2818_v46  ;;  %v2285_v47 = vadd.f32 -0.5, %v2818_v46  ;;  %1628 = vmatpush2.msra.mxu0 %v1314_v35  ;;  %v1261_v35 = vld [vmem:[%s4050_s14 + $0x280] sm:$0xff] }
 0x392   :  { %2429 = vmatprep.mubr.msk.f32.mxu1 %vm2475_vm2, %v2472_v0  ;;  %2426 = vmatpush3.msk.msra.mxu1 %vm833_vm6, %v909_v52  ;;  %vm2219_vm2 = vmor %vm2218_vm15, %vm2217_vm14 }
 0x393   :  { %v2145_v48 = vmul.f32 2.0, %v2285_v47  ;;  %2427 = vmatprep.subr.mxu1 %v2472_v0  ;;  %1629 = vmatprep.subr.mxu0 %v1308_v37  ;;  %v1260_v37 = vld [vmem:[%s4050_s14 + $0x278] sm:$0xff] }
 0x394   :  { %2428 = vmatpush3.msra.mxu1 %v908_v53  ;;  %1630 = vmatpush2.msra.mxu0 %v1307_v39  ;;  %v1254_v39 = vld [vmem:[%s4050_s14 + $0x248] sm:$0xff] }
 0x395   :  { %2147 = vst.msk [vmem:[%s4047_s16] sm:$0x3] %vm2146_vm8, %v2145_v48  ;;  %2275 = vmatprep.subr.msk.mxu1 %vm833_vm6, %v998_v54  ;;  %1631 = vmatprep.subr.mxu0 %v1301_v41  ;;  %v1253_v41 = vld [vmem:[%s4050_s14 + $0x240] sm:$0xff] }
 0x396   :  { %v2455_v49 = vpop.eup %2454  ;;  %v2406_v42 = vpop.f32.mrf.mxu1  ;;  %1632 = vmatpush2.msra.mxu0 %v1300_v43  ;;  %v1247_v43 = vld [vmem:[%s4050_s14 + $0x210] sm:$0xff] }
 0x397   :  { %699 = vperm.xlu1 %2441, %v2455_v49   ;;  %1633 = vmatprep.subr.mxu0 %v1294_v45  ;;  %v1246_v45 = vld [vmem:[%s4050_s14 + $0x208] sm:$0xff] }
 0x398   :  { %v2457_v50 = vpop.eup %2456  ;;  %v683_v48 = vpop.f32.mrf.mxu1 }
 0x399   :  { %694 = vperm.xlu0 %2440, %v2457_v50  }
 0x39b   :  { %2442 = vset.pattern.permute.xlu1 %v2476_v51 }
 0x39c   :  { %811 = vperm.xlu1 %2442, %v2455_v49  }
 0x39d   :  { %2443 = vset.pattern.permute.xlu0 %v2476_v51 }
 0x39e   :  { %807 = vperm.xlu0 %2443, %v2457_v50  }
 0x3f1   :  { %v2417_v51 = vpop.f32.mrf.mxu1 }
 0x3f3   :  { %v797_v55 = vpop.f32.mrf.mxu1 }
 0x412   :  { %v700_v47 = vpop.permute.xlu1 %699 }
 0x413   :  { %v703_v49 = vmul.f32 %v2406_v42, %v700_v47  ;;  %v1413_v42 = vld [vmem:[%s4050_s14 + $0x740] sm:$0xff]  ;;  %v1406_v47 = vld [vmem:[%s4050_s14 + $0x708] sm:$0xff] }
 0x414   :  { %v695_v50 = vpop.permute.xlu0 %694 }
 0x415   :  { %706 = vst.msk [vmem:[%s4051_s18 + $0x8] sm:$0x3] %vm705_vm9, %v703_v49  ;;  %v702_v52 = vmul.f32 %v695_v50, %v683_v48  ;;  %v1293_v48 = vld [vmem:[%s4050_s14 + $0x380] sm:$0xff] }
 0x416   :  { %v1405_v49 = vld [vmem:[%s4050_s14 + $0x700] sm:$0xff]  ;;  %1634 = vmatpush2.msra.mxu0 %v1293_v48  ;;  %v1240_v48 = vld [vmem:[%s4050_s14 + $0x1d8] sm:$0xff] }
 0x417   :  { %704 = vst.msk [vmem:[%s4051_s18] sm:$0xff] %vm244_vm1, %v702_v52  ;;  %v812_v53 = vpop.permute.xlu1 %811  ;;  %v1525_v50 = vld [vmem:[%s4050_s14 + $0xac0] sm:$0xff]  ;;  %v1524_v52 = vld [vmem:[%s4050_s14 + $0xab8] sm:$0xff] }
 0x418   :  { %v815_v54 = vmul.f32 %v2417_v51, %v812_v53  ;;  %v1513_v51 = vld [vmem:[%s4050_s14 + $0xa60] sm:$0xff]  ;;  %v1518_v53 = vld [vmem:[%s4050_s14 + $0xa88] sm:$0xff] }
 0x419   :  { %v808_v56 = vpop.permute.xlu0 %807  ;;  %1784 = vmatprep.subr.mxu0 %v1513_v51  ;;  %v1449_v51 = vld [vmem:[%s4050_s14 + $0x860] sm:$0xff] }
 0x41a   :  { %2268 = vst.msk [vmem:[%s4051_s18 + $0x18] sm:$0x3] %vm705_vm9, %v815_v54  ;;  %v814_v57 = vmul.f32 %v808_v56, %v797_v55  ;;  %v1517_v54 = vld [vmem:[%s4050_s14 + $0xa80] sm:$0xff]  ;;  %v1003_v56 = vlaneseq }
 0x41b   :  { %v1289_v55 = vld [vmem:[%s4050_s14 + $0x360] sm:$0xff] }
 0x41c   :  { %2267 = vst.msk [vmem:[%s4051_s18 + $0x10] sm:$0xff] %vm244_vm1, %v814_v57  ;;  %v3196_v57 = vshrl.u32 %v1003_v56, 7  ;;  %v1226_v56 = vld [vmem:[%s4050_s14 + $0x168] sm:$0xff]  ;;  %vm2159_vm1 = vcmask 156752  }
 0x451   :  { %v903_v59 = vpop.f32.mrf.mxu1 }
 0x452   :  { %v904_v60 = vadd.f32 %v2269_v58, %v903_v59  ;;  %v1005_v58 = vsub.s32 0, %v3196_v57  ;;  %v1001_v59 = vld [vmem:[%s4053_s13] sm:$0xf] }
 0x453   :  { %v2424_v61 = vpop.f32.mrf.mxu1 }
 0x454   :  { %v907_v62 = vmax.f32 %v904_v60, 0.0  ;;  %v1009_v60 = vsub.s32 1, %v3196_v57 }
 0x456   :  { %2430 = vmatmul.mubr.msk.f32.vlgmr.msra.gmra.mxu1 %vm829_vm7, %v907_v62 }
 0x457   :  { %2276 = vmatpush1.msk.msra.mxu1 %vm833_vm6, %v997_v63  ;;  %1099 = vmatprep.mubr.f32.mxu1 %v2472_v0  ;;  %v1006_v63 = vrot.slane %v1001_v59, %v1005_v58 }
 0x458   :  { %1065 = vmatprep.subr.mxu1 %v994_v1  ;;  %v1010_v1 = vrot.slane %v1001_v59, %v1009_v60 }
 0x459   :  { %1066 = vmatpush1.msra.mxu1 %v993_v2  ;;  %v1013_v2 = vsub.s32 2, %v3196_v57 }
 0x45a   :  { %2277 = vmatmul.mubr.msk.f32.vlgmr.msra.gmra.mxu1 %vm829_vm7, %v2818_v46  ;;  %2278 = vmatprep.subr.msk.mxu1 %vm833_vm6, %v1000_v3  ;;  %v1017_v3 = vsub.s32 3, %v3196_v57 }
 0x45b   :  { %2279 = vmatpush1.msk.msra.mxu1 %vm833_vm6, %v999_v4  ;;  %1170 = vmatprep.mubr.f32.mxu1 %v2472_v0 }
 0x45c   :  { %1136 = vmatprep.subr.mxu1 %v996_v5 }
 0x45d   :  { %1137 = vmatpush1.msra.mxu1 %v995_v6 }
 0x45e   :  { %2280 = vmatmul.mubr.msk.f32.vlgmr.msra.gmra.mxu1 %vm829_vm7, %v2818_v46  ;;  %1642 = vmatprep.subr.mxu1 %v1511_v7  ;;  %v1490_v46 = vld [vmem:[%s4050_s14 + $0x9a8] sm:$0xff] }
 0x45f   :  { %1643 = vmatpush1.msra.mxu1 %v1510_v8  ;;  %v1014_v8 = vrot.slane %v1001_v59, %v1013_v2 }
 0x460   :  { %1644 = vmatprep.subr.mxu1 %v1504_v9  ;;  %v1018_v9 = vrot.slane %v1001_v59, %v1017_v3  ;;  %v1436_v59 = vld [vmem:[%s4050_s14 + $0x7f8] sm:$0xff] }
 0x461   :  { %1645 = vmatpush1.msra.mxu1 %v1503_v10 }
 0x462   :  { %1646 = vmatprep.subr.mxu1 %v1497_v11 }
 0x463   :  { %1647 = vmatpush1.msra.mxu1 %v1496_v12 }
 0x464   :  { %1648 = vmatprep.subr.mxu1 %v1490_v46 }
 0x465   :  { %1649 = vmatpush1.msra.mxu1 %v1489_v13  ;;  %v1512_v13 = vld [vmem:[%s4050_s14 + $0xa58] sm:$0xff] }
 0x466   :  { %1650 = vmatprep.subr.mxu1 %v1483_v14 }
 0x467   :  { %1651 = vmatpush1.msra.mxu1 %v1482_v15 }
 0x468   :  { %1652 = vmatprep.subr.mxu1 %v1476_v16  ;;  %v1506_v16 = vld [vmem:[%s4050_s14 + $0xa28] sm:$0xff] }
 0x469   :  { %1653 = vmatpush1.msra.mxu1 %v1475_v17  ;;  %v1505_v17 = vld [vmem:[%s4050_s14 + $0xa20] sm:$0xff] }
 0x46a   :  { %1654 = vmatprep.subr.mxu1 %v1469_v18 }
 0x46b   :  { %1655 = vmatpush1.msra.mxu1 %v1468_v19  ;;  %v1499_v19 = vld [vmem:[%s4050_s14 + $0x9f0] sm:$0xff] }
 0x46c   :  { %1656 = vmatprep.subr.mxu1 %v1462_v20  ;;  %v1498_v20 = vld [vmem:[%s4050_s14 + $0x9e8] sm:$0xff] }
 0x46d   :  { %1657 = vmatpush1.msra.mxu1 %v1461_v21 }
 0x46e   :  { %1658 = vmatprep.subr.mxu1 %v1455_v22  ;;  %v1288_v22 = vld [vmem:[%s4050_s14 + $0x358] sm:$0xff] }
 0x46f   :  { %1659 = vmatpush1.msra.mxu1 %v1454_v23  ;;  %v1282_v23 = vld [vmem:[%s4050_s14 + $0x328] sm:$0xff] }
 0x470   :  { %1660 = vmatprep.subr.mxu1 %v1448_v24  ;;  %v1492_v24 = vld [vmem:[%s4050_s14 + $0x9b8] sm:$0xff] }
 0x471   :  { %1661 = vmatpush1.msra.mxu1 %v1447_v25  ;;  %v1281_v25 = vld [vmem:[%s4050_s14 + $0x320] sm:$0xff] }
 0x472   :  { %1662 = vmatprep.subr.mxu1 %v1441_v26  ;;  %v1491_v26 = vld [vmem:[%s4050_s14 + $0x9b0] sm:$0xff] }
 0x473   :  { %1663 = vmatpush1.msra.mxu1 %v1440_v28  ;;  %v1485_v28 = vld [vmem:[%s4050_s14 + $0x980] sm:$0xff] }
 0x474   :  { %1664 = vmatprep.subr.mxu1 %v1434_v30  ;;  %v1484_v30 = vld [vmem:[%s4050_s14 + $0x978] sm:$0xff] }
 0x475   :  { %1665 = vmatpush1.msra.mxu1 %v1433_v32  ;;  %v1478_v32 = vld [vmem:[%s4050_s14 + $0x948] sm:$0xff] }
 0x476   :  { %1666 = vmatprep.subr.mxu1 %v1427_v34  ;;  %v1477_v34 = vld [vmem:[%s4050_s14 + $0x940] sm:$0xff] }
 0x477   :  { %1667 = vmatpush1.msra.mxu1 %v1426_v36  ;;  %v1471_v36 = vld [vmem:[%s4050_s14 + $0x910] sm:$0xff] }
 0x478   :  { %1668 = vmatprep.subr.mxu1 %v1420_v38  ;;  %v1470_v38 = vld [vmem:[%s4050_s14 + $0x908] sm:$0xff] }
 0x479   :  { %1669 = vmatpush1.msra.mxu1 %v1419_v40  ;;  %v1464_v40 = vld [vmem:[%s4050_s14 + $0x8d8] sm:$0xff] }
 0x47a   :  { %1670 = vmatprep.subr.mxu1 %v1413_v42  ;;  %v1463_v42 = vld [vmem:[%s4050_s14 + $0x8d0] sm:$0xff] }
 0x47b   :  { %1671 = vmatpush1.msra.mxu1 %v1412_v44  ;;  %v1457_v44 = vld [vmem:[%s4050_s14 + $0x8a0] sm:$0xff] }
 0x47c   :  { %1672 = vmatprep.subr.mxu1 %v1406_v47  ;;  %v1456_v47 = vld [vmem:[%s4050_s14 + $0x898] sm:$0xff] }
 0x47d   :  { %1673 = vmatpush1.msra.mxu1 %v1405_v49  ;;  %v1450_v49 = vld [vmem:[%s4050_s14 + $0x868] sm:$0xff] }
 0x47e   :  { %1702 = vmatprep.subr.mxu1 %v1525_v50  ;;  %v1239_v50 = vld [vmem:[%s4050_s14 + $0x1d0] sm:$0xff] }
 0x47f   :  { %1703 = vmatpush2.msra.mxu1 %v1524_v52  ;;  %v1233_v52 = vld [vmem:[%s4050_s14 + $0x1a0] sm:$0xff] }
 0x480   :  { %1704 = vmatprep.subr.mxu1 %v1518_v53  ;;  %v1443_v53 = vld [vmem:[%s4050_s14 + $0x830] sm:$0xff] }
 0x481   :  { %1705 = vmatpush2.msra.mxu1 %v1517_v54  ;;  %v1232_v54 = vld [vmem:[%s4050_s14 + $0x198] sm:$0xff] }
 0x482   :  { %1713 = vmatprep.subr.mxu1 %v1289_v55  ;;  %v1442_v55 = vld [vmem:[%s4050_s14 + $0x828] sm:$0xff] }
 0x516   :  { %v3203_v61 = vpop.f32.mrf.mxu1 }
 0x518   :  { %v2431_v62 = vpop.f32.mrf.mxu1 }
 0x519   :  { %v1225_v62 = vld [vmem:[%s4050_s14 + $0x160] sm:$0xff] }
 0x51a   :  { %v1101_v4 = vpop.f32.mrf.mxu1 }
 0x51b   :  { %v1102_v5 = vadd.f32 %v1101_v4, %v1006_v63  ;;  %v1435_v63 = vld [vmem:[%s4050_s14 + $0x7f0] sm:$0xff]  ;;  %v1429_v4 = vld [vmem:[%s4050_s14 + $0x7c0] sm:$0xff] }
 0x51c   :  { %v1103_v6 = vpop.f32.mrf.mxu1 }
 0x51d   :  { %v1104_v7 = vadd.f32 %v1103_v6, %v1010_v1  ;;  %v3217_v12 = vmax.f32 %v1102_v5, 0.0  ;;  %v1219_v1 = vld [vmem:[%s4050_s14 + $0x130] sm:$0xff]  ;;  %v1218_v5 = vld [vmem:[%s4050_s14 + $0x128] sm:$0xff]  ;;  %v1428_v6 = vld [vmem:[%s4050_s14 + $0x7b8] sm:$0xff] }
 0x51e   :  { %v1172_v10 = vpop.f32.mrf.mxu1 }
 0x51f   :  { %v3215_v11 = vmax.f32 %v1104_v7, 0.0  ;;  %v1173_v14 = vadd.f32 %v1172_v10, %v1014_v8  ;;  %v1212_v7 = vld [vmem:[%s4050_s14 + $0xf8] sm:$0xff]  ;;  %v1422_v8 = vld [vmem:[%s4050_s14 + $0x788] sm:$0xff]  ;;  %v1421_v10 = vld [vmem:[%s4050_s14 + $0x780] sm:$0xff] }
 0x520   :  { %v1174_v46 = vpop.f32.mrf.mxu1 }
 0x521   :  { %v1175_v15 = vadd.f32 %v1174_v46, %v1018_v9  ;;  %1635 = vmatprep.mubr.f32.mxu0 %v3215_v11  ;;  %v3238_v21 = vmax.f32 %v1173_v14, 0.0  ;;  %v1211_v9 = vld [vmem:[%s4050_s14 + $0xf0] sm:$0xff]  ;;  %v1205_v46 = vld [vmem:[%s4050_s14 + $0xc0] sm:$0xff]  ;;  %v1204_v14 = vld [vmem:[%s4050_s14 + $0xb8] sm:$0xff] }
 0x522   :  { %1636 = vmatmul.mubr.f32.vlgmr.msra.gmra.mxu0 %v3217_v12 }
 0x523   :  { %v3230_v18 = vmax.f32 %v1175_v15, 0.0  ;;  %1785 = vmatpush1.msra.mxu0 %v1512_v13  ;;  %v1415_v13 = vld [vmem:[%s4050_s14 + $0x750] sm:$0xff]  ;;  %v1414_v15 = vld [vmem:[%s4050_s14 + $0x748] sm:$0xff] }
 0x524   :  { %1786 = vmatprep.subr.mxu0 %v1506_v16  ;;  %v1198_v16 = vld [vmem:[%s4050_s14 + $0x88] sm:$0xff] }
 0x525   :  { %1787 = vmatpush1.msra.mxu0 %v1505_v17  ;;  %2281 = vmatprep.mubr.msk.f32.mxu1 %vm106_vm0, %v3230_v18  ;;  %v1408_v17 = vld [vmem:[%s4050_s14 + $0x718] sm:$0xff] }
 0x526   :  { %1788 = vmatprep.subr.mxu0 %v1499_v19  ;;  %2282 = vmatprep.mubr.msk.f32.mxu0 %vm106_vm0, %v3230_v18  ;;  %v1197_v19 = vld [vmem:[%s4050_s14 + $0x80] sm:$0xff] }
 0x527   :  { %1707 = vmatmul.mubr.f32.vlgmr.msra.gmra.mxu1 %v3238_v21  ;;  %1789 = vmatpush1.msra.mxu0 %v1498_v20  ;;  %v1407_v20 = vld [vmem:[%s4050_s14 + $0x710] sm:$0xff] }
 0x528   :  { %1714 = vmatpush1.msra.mxu1 %v1288_v22  ;;  %1777 = vmatprep.mubr.f32.mxu1 %v3215_v11  ;;  %v1191_v22 = vld [vmem:[%s4050_s14 + $0x50] sm:$0xff] }
 0x529   :  { %1715 = vmatprep.subr.mxu1 %v1282_v23  ;;  %1790 = vmatprep.subr.mxu0 %v1492_v24  ;;  %v1527_v23 = vld [vmem:[%s4050_s14 + $0xad0] sm:$0xff]  ;;  %v1190_v24 = vld [vmem:[%s4050_s14 + $0x48] sm:$0xff] }
 0x52a   :  { %1716 = vmatpush1.msra.mxu1 %v1281_v25  ;;  %1791 = vmatpush1.msra.mxu0 %v1491_v26  ;;  %v1526_v25 = vld [vmem:[%s4050_s14 + $0xac8] sm:$0xff]  ;;  %v1184_v26 = vld [vmem:[%s4050_s14 + $0x18] sm:$0xff] }
 0x52b   :  { %1717 = vmatprep.subr.mxu1 %v1275_v27  ;;  %1792 = vmatprep.subr.mxu0 %v1485_v28  ;;  %v1520_v27 = vld [vmem:[%s4050_s14 + $0xa98] sm:$0xff]  ;;  %v1183_v28 = vld [vmem:[%s4050_s14 + $0x10] sm:$0xff] }
 0x52c   :  { %1718 = vmatpush1.msra.mxu1 %v1274_v29  ;;  %1793 = vmatpush1.msra.mxu0 %v1484_v30  ;;  %v1519_v29 = vld [vmem:[%s4050_s14 + $0xa90] sm:$0xff]  ;;  %v1401_v30 = vld [vmem:[%s4050_s14 + $0x6e0] sm:$0xff] }
 0x52d   :  { %1719 = vmatprep.subr.mxu1 %v1268_v31  ;;  %1794 = vmatprep.subr.mxu0 %v1478_v32  ;;  %v1291_v31 = vld [vmem:[%s4050_s14 + $0x370] sm:$0xff]  ;;  %v1400_v32 = vld [vmem:[%s4050_s14 + $0x6d8] sm:$0xff] }
 0x52e   :  { %1720 = vmatpush1.msra.mxu1 %v1267_v33  ;;  %1795 = vmatpush1.msra.mxu0 %v1477_v34  ;;  %v1290_v33 = vld [vmem:[%s4050_s14 + $0x368] sm:$0xff] }
 0x52f   :  { %1721 = vmatprep.subr.mxu1 %v1261_v35  ;;  %1796 = vmatprep.subr.mxu0 %v1471_v36  ;;  %v1394_v34 = vld [vmem:[%s4050_s14 + $0x6a8] sm:$0xff]  ;;  %v1284_v35 = vld [vmem:[%s4050_s14 + $0x338] sm:$0xff]  ;;  %v1393_v36 = vld [vmem:[%s4050_s14 + $0x6a0] sm:$0xff] }
 0x530   :  { %1722 = vmatpush1.msra.mxu1 %v1260_v37  ;;  %1797 = vmatpush1.msra.mxu0 %v1470_v38  ;;  %v1283_v37 = vld [vmem:[%s4050_s14 + $0x330] sm:$0xff] }
 0x531   :  { %1723 = vmatprep.subr.mxu1 %v1254_v39  ;;  %1798 = vmatprep.subr.mxu0 %v1464_v40  ;;  %v1387_v38 = vld [vmem:[%s4050_s14 + $0x670] sm:$0xff]  ;;  %v1277_v39 = vld [vmem:[%s4050_s14 + $0x300] sm:$0xff]  ;;  %v1386_v40 = vld [vmem:[%s4050_s14 + $0x668] sm:$0xff] }
 0x532   :  { %1724 = vmatpush1.msra.mxu1 %v1253_v41  ;;  %1799 = vmatpush1.msra.mxu0 %v1463_v42  ;;  %v1276_v41 = vld [vmem:[%s4050_s14 + $0x2f8] sm:$0xff] }
 0x533   :  { %1725 = vmatprep.subr.mxu1 %v1247_v43  ;;  %1800 = vmatprep.subr.mxu0 %v1457_v44  ;;  %v1380_v42 = vld [vmem:[%s4050_s14 + $0x638] sm:$0xff]  ;;  %v1270_v43 = vld [vmem:[%s4050_s14 + $0x2c8] sm:$0xff]  ;;  %v1379_v44 = vld [vmem:[%s4050_s14 + $0x630] sm:$0xff] }
 0x534   :  { %1726 = vmatpush1.msra.mxu1 %v1246_v45  ;;  %1801 = vmatpush1.msra.mxu0 %v1456_v47  ;;  %v1269_v45 = vld [vmem:[%s4050_s14 + $0x2c0] sm:$0xff] }
 0x535   :  { %1727 = vmatprep.subr.mxu1 %v1240_v48  ;;  %1802 = vmatprep.subr.mxu0 %v1450_v49  ;;  %v1373_v47 = vld [vmem:[%s4050_s14 + $0x600] sm:$0xff]  ;;  %v1263_v48 = vld [vmem:[%s4050_s14 + $0x290] sm:$0xff]  ;;  %v1372_v49 = vld [vmem:[%s4050_s14 + $0x5f8] sm:$0xff] }
 0x536   :  { %1728 = vmatpush1.msra.mxu1 %v1239_v50  ;;  %1803 = vmatpush1.msra.mxu0 %v1449_v51  ;;  %v1262_v50 = vld [vmem:[%s4050_s14 + $0x288] sm:$0xff] }
 0x537   :  { %1729 = vmatprep.subr.mxu1 %v1233_v52  ;;  %1804 = vmatprep.subr.mxu0 %v1443_v53  ;;  %v1366_v51 = vld [vmem:[%s4050_s14 + $0x5c8] sm:$0xff]  ;;  %v1256_v52 = vld [vmem:[%s4050_s14 + $0x258] sm:$0xff]  ;;  %v1365_v53 = vld [vmem:[%s4050_s14 + $0x5c0] sm:$0xff] }
 0x538   :  { %1730 = vmatpush1.msra.mxu1 %v1232_v54  ;;  %1805 = vmatpush1.msra.mxu0 %v1442_v55  ;;  %v1255_v54 = vld [vmem:[%s4050_s14 + $0x250] sm:$0xff] }
 0x539   :  { %1731 = vmatprep.subr.mxu1 %v1226_v56  ;;  %1806 = vmatprep.subr.mxu0 %v1436_v59  ;;  %v1359_v55 = vld [vmem:[%s4050_s14 + $0x590] sm:$0xff]  ;;  %v1249_v56 = vld [vmem:[%s4050_s14 + $0x220] sm:$0xff]  ;;  %v1358_v59 = vld [vmem:[%s4050_s14 + $0x588] sm:$0xff] }
 0x53a   :  { %1732 = vmatpush1.msra.mxu1 %v1225_v62  ;;  %1807 = vmatpush1.msra.mxu0 %v1435_v63  ;;  %v1248_v62 = vld [vmem:[%s4050_s14 + $0x218] sm:$0xff] }
 0x53b   :  { %1733 = vmatprep.subr.mxu1 %v1219_v1  ;;  %1808 = vmatprep.subr.mxu0 %v1429_v4  ;;  %v1352_v63 = vld [vmem:[%s4050_s14 + $0x558] sm:$0xff]  ;;  %v1242_v1 = vld [vmem:[%s4050_s14 + $0x1e8] sm:$0xff]  ;;  %v1351_v4 = vld [vmem:[%s4050_s14 + $0x550] sm:$0xff] }
 0x53c   :  { %1734 = vmatpush1.msra.mxu1 %v1218_v5  ;;  %1809 = vmatpush1.msra.mxu0 %v1428_v6  ;;  %v1241_v5 = vld [vmem:[%s4050_s14 + $0x1e0] sm:$0xff] }
 0x53d   :  { %1735 = vmatprep.subr.mxu1 %v1212_v7  ;;  %1810 = vmatprep.subr.mxu0 %v1422_v8  ;;  %v1345_v6 = vld [vmem:[%s4050_s14 + $0x520] sm:$0xff]  ;;  %v1235_v7 = vld [vmem:[%s4050_s14 + $0x1b0] sm:$0xff]  ;;  %v1344_v8 = vld [vmem:[%s4050_s14 + $0x518] sm:$0xff] }
 0x53e   :  { %1736 = vmatpush1.msra.mxu1 %v1211_v9  ;;  %1811 = vmatpush1.msra.mxu0 %v1421_v10  ;;  %v1234_v9 = vld [vmem:[%s4050_s14 + $0x1a8] sm:$0xff] }
 0x53f   :  { %1737 = vmatprep.subr.mxu1 %v1205_v46  ;;  %1812 = vmatprep.subr.mxu0 %v1415_v13  ;;  %v1338_v10 = vld [vmem:[%s4050_s14 + $0x4e8] sm:$0xff]  ;;  %v1228_v46 = vld [vmem:[%s4050_s14 + $0x178] sm:$0xff]  ;;  %v1337_v13 = vld [vmem:[%s4050_s14 + $0x4e0] sm:$0xff] }
 0x540   :  { %1738 = vmatpush1.msra.mxu1 %v1204_v14  ;;  %1813 = vmatpush1.msra.mxu0 %v1414_v15  ;;  %v1227_v14 = vld [vmem:[%s4050_s14 + $0x170] sm:$0xff] }
 0x541   :  { %1739 = vmatprep.subr.mxu1 %v1198_v16  ;;  %1814 = vmatprep.subr.mxu0 %v1408_v17  ;;  %v1331_v15 = vld [vmem:[%s4050_s14 + $0x4b0] sm:$0xff]  ;;  %v1221_v16 = vld [vmem:[%s4050_s14 + $0x140] sm:$0xff]  ;;  %v1330_v17 = vld [vmem:[%s4050_s14 + $0x4a8] sm:$0xff] }
 0x542   :  { %1740 = vmatpush1.msra.mxu1 %v1197_v19  ;;  %1815 = vmatpush1.msra.mxu0 %v1407_v20  ;;  %v1220_v19 = vld [vmem:[%s4050_s14 + $0x138] sm:$0xff] }
 0x543   :  { %1741 = vmatprep.subr.mxu1 %v1191_v22  ;;  %1844 = vmatprep.subr.mxu0 %v1527_v23  ;;  %v1324_v20 = vld [vmem:[%s4050_s14 + $0x478] sm:$0xff]  ;;  %v1214_v22 = vld [vmem:[%s4050_s14 + $0x108] sm:$0xff]  ;;  %v1323_v23 = vld [vmem:[%s4050_s14 + $0x470] sm:$0xff] }
 0x544   :  { %1742 = vmatpush1.msra.mxu1 %v1190_v24  ;;  %1845 = vmatpush2.msra.mxu0 %v1526_v25  ;;  %v1213_v24 = vld [vmem:[%s4050_s14 + $0x100] sm:$0xff] }
 0x545   :  { %1743 = vmatprep.subr.mxu1 %v1184_v26  ;;  %1846 = vmatprep.subr.mxu0 %v1520_v27  ;;  %v1317_v25 = vld [vmem:[%s4050_s14 + $0x440] sm:$0xff]  ;;  %v1207_v26 = vld [vmem:[%s4050_s14 + $0xd0] sm:$0xff]  ;;  %v1316_v27 = vld [vmem:[%s4050_s14 + $0x438] sm:$0xff] }
 0x546   :  { %1744 = vmatpush1.msra.mxu1 %v1183_v28  ;;  %1847 = vmatpush2.msra.mxu0 %v1519_v29  ;;  %v1206_v28 = vld [vmem:[%s4050_s14 + $0xc8] sm:$0xff] }
 0x547   :  { %1745 = vmatprep.subr.mxu1 %v1401_v30  ;;  %1849 = vmatmul.mubr.f32.vlgmr.msra.gmra.mxu0 %v3238_v21  ;;  %v1310_v29 = vld [vmem:[%s4050_s14 + $0x408] sm:$0xff]  ;;  %v1200_v30 = vld [vmem:[%s4050_s14 + $0x98] sm:$0xff] }
 0x548   :  { %1855 = vmatprep.subr.mxu0 %v1291_v31  ;;  %1746 = vmatpush2.msra.mxu1 %v1400_v32  ;;  %v1309_v31 = vld [vmem:[%s4050_s14 + $0x400] sm:$0xff]  ;;  %v1199_v32 = vld [vmem:[%s4050_s14 + $0x90] sm:$0xff] }
 0x549   :  { %1856 = vmatpush1.msra.mxu0 %v1290_v33  ;;  %1919 = vmatprep.mubr.f32.mxu0 %v3215_v11  ;;  %v1303_v33 = vld [vmem:[%s4050_s14 + $0x3d0] sm:$0xff] }
 0x54a   :  { %1747 = vmatprep.subr.mxu1 %v1394_v34  ;;  %1857 = vmatprep.subr.mxu0 %v1284_v35  ;;  %v1193_v34 = vld [vmem:[%s4050_s14 + $0x60] sm:$0xff]  ;;  %v1302_v35 = vld [vmem:[%s4050_s14 + $0x3c8] sm:$0xff] }
 0x54b   :  { %1748 = vmatpush2.msra.mxu1 %v1393_v36  ;;  %1858 = vmatpush1.msra.mxu0 %v1283_v37  ;;  %v1192_v36 = vld [vmem:[%s4050_s14 + $0x58] sm:$0xff] }
 0x54c   :  { %1749 = vmatprep.subr.mxu1 %v1387_v38  ;;  %1859 = vmatprep.subr.mxu0 %v1277_v39  ;;  %v1296_v37 = vld [vmem:[%s4050_s14 + $0x398] sm:$0xff]  ;;  %v1186_v38 = vld [vmem:[%s4050_s14 + $0x28] sm:$0xff]  ;;  %v1295_v39 = vld [vmem:[%s4050_s14 + $0x390] sm:$0xff] }
 0x54d   :  { %1750 = vmatpush2.msra.mxu1 %v1386_v40  ;;  %1860 = vmatpush1.msra.mxu0 %v1276_v41  ;;  %v1185_v40 = vld [vmem:[%s4050_s14 + $0x20] sm:$0xff]  ;;  %v1403_v41 = vld [vmem:[%s4050_s14 + $0x6f0] sm:$0xff] }
 0x54e   :  { %1751 = vmatprep.subr.mxu1 %v1380_v42  ;;  %1861 = vmatprep.subr.mxu0 %v1270_v43  ;;  %v1515_v42 = vld [vmem:[%s4050_s14 + $0xa70] sm:$0xff]  ;;  %v1402_v43 = vld [vmem:[%s4050_s14 + $0x6e8] sm:$0xff] }
 0x54f   :  { %1752 = vmatpush2.msra.mxu1 %v1379_v44  ;;  %1862 = vmatpush1.msra.mxu0 %v1269_v45  ;;  %v1514_v44 = vld [vmem:[%s4050_s14 + $0xa68] sm:$0xff]  ;;  %v1396_v45 = vld [vmem:[%s4050_s14 + $0x6b8] sm:$0xff] }
 0x550   :  { %1753 = vmatprep.subr.mxu1 %v1373_v47  ;;  %1863 = vmatprep.subr.mxu0 %v1263_v48  ;;  %v1508_v47 = vld [vmem:[%s4050_s14 + $0xa38] sm:$0xff]  ;;  %v1395_v48 = vld [vmem:[%s4050_s14 + $0x6b0] sm:$0xff] }
 0x551   :  { %1754 = vmatpush2.msra.mxu1 %v1372_v49  ;;  %1864 = vmatpush1.msra.mxu0 %v1262_v50  ;;  %v1507_v49 = vld [vmem:[%s4050_s14 + $0xa30] sm:$0xff]  ;;  %v1389_v50 = vld [vmem:[%s4050_s14 + $0x680] sm:$0xff] }
 0x552   :  { %1755 = vmatprep.subr.mxu1 %v1366_v51  ;;  %1865 = vmatprep.subr.mxu0 %v1256_v52  ;;  %v1501_v51 = vld [vmem:[%s4050_s14 + $0xa00] sm:$0xff]  ;;  %v1388_v52 = vld [vmem:[%s4050_s14 + $0x678] sm:$0xff] }
 0x553   :  { %1756 = vmatpush2.msra.mxu1 %v1365_v53  ;;  %1866 = vmatpush1.msra.mxu0 %v1255_v54  ;;  %v1500_v53 = vld [vmem:[%s4050_s14 + $0x9f8] sm:$0xff]  ;;  %v1382_v54 = vld [vmem:[%s4050_s14 + $0x648] sm:$0xff] }
 0x554   :  { %1757 = vmatprep.subr.mxu1 %v1359_v55  ;;  %1867 = vmatprep.subr.mxu0 %v1249_v56  ;;  %v1494_v55 = vld [vmem:[%s4050_s14 + $0x9c8] sm:$0xff]  ;;  %v1381_v56 = vld [vmem:[%s4050_s14 + $0x640] sm:$0xff] }
 0x555   :  { %1758 = vmatpush2.msra.mxu1 %v1358_v59  ;;  %1868 = vmatpush1.msra.mxu0 %v1248_v62  ;;  %v1493_v59 = vld [vmem:[%s4050_s14 + $0x9c0] sm:$0xff]  ;;  %v1375_v62 = vld [vmem:[%s4050_s14 + $0x610] sm:$0xff] }
 0x556   :  { %1759 = vmatprep.subr.mxu1 %v1352_v63  ;;  %1869 = vmatprep.subr.mxu0 %v1242_v1  ;;  %v1487_v63 = vld [vmem:[%s4050_s14 + $0x990] sm:$0xff]  ;;  %v1374_v1 = vld [vmem:[%s4050_s14 + $0x608] sm:$0xff] }
 0x557   :  { %1760 = vmatpush2.msra.mxu1 %v1351_v4  ;;  %1870 = vmatpush1.msra.mxu0 %v1241_v5  ;;  %v1486_v4 = vld [vmem:[%s4050_s14 + $0x988] sm:$0xff]  ;;  %v1368_v5 = vld [vmem:[%s4050_s14 + $0x5d8] sm:$0xff] }
 0x558   :  { %1761 = vmatprep.subr.mxu1 %v1345_v6  ;;  %1871 = vmatprep.subr.mxu0 %v1235_v7  ;;  %v1480_v6 = vld [vmem:[%s4050_s14 + $0x958] sm:$0xff]  ;;  %v1367_v7 = vld [vmem:[%s4050_s14 + $0x5d0] sm:$0xff] }
 0x559   :  { %1762 = vmatpush2.msra.mxu1 %v1344_v8  ;;  %1872 = vmatpush1.msra.mxu0 %v1234_v9  ;;  %v1479_v8 = vld [vmem:[%s4050_s14 + $0x950] sm:$0xff]  ;;  %v1361_v9 = vld [vmem:[%s4050_s14 + $0x5a0] sm:$0xff] }
 0x55a   :  { %1763 = vmatprep.subr.mxu1 %v1338_v10  ;;  %1873 = vmatprep.subr.mxu0 %v1228_v46  ;;  %v1473_v10 = vld [vmem:[%s4050_s14 + $0x920] sm:$0xff]  ;;  %v1360_v46 = vld [vmem:[%s4050_s14 + $0x598] sm:$0xff] }
 0x55b   :  { %1764 = vmatpush2.msra.mxu1 %v1337_v13  ;;  %1874 = vmatpush1.msra.mxu0 %v1227_v14  ;;  %v1472_v13 = vld [vmem:[%s4050_s14 + $0x918] sm:$0xff]  ;;  %v1354_v14 = vld [vmem:[%s4050_s14 + $0x568] sm:$0xff] }
 0x55c   :  { %1765 = vmatprep.subr.mxu1 %v1331_v15  ;;  %1875 = vmatprep.subr.mxu0 %v1221_v16  ;;  %v1466_v15 = vld [vmem:[%s4050_s14 + $0x8e8] sm:$0xff]  ;;  %v1353_v16 = vld [vmem:[%s4050_s14 + $0x560] sm:$0xff] }
 0x55d   :  { %1766 = vmatpush2.msra.mxu1 %v1330_v17  ;;  %1876 = vmatpush1.msra.mxu0 %v1220_v19  ;;  %v1465_v17 = vld [vmem:[%s4050_s14 + $0x8e0] sm:$0xff]  ;;  %v1347_v19 = vld [vmem:[%s4050_s14 + $0x530] sm:$0xff] }
 0x55e   :  { %1767 = vmatprep.subr.mxu1 %v1324_v20  ;;  %1877 = vmatprep.subr.mxu0 %v1214_v22  ;;  %v1459_v20 = vld [vmem:[%s4050_s14 + $0x8b0] sm:$0xff]  ;;  %v1346_v22 = vld [vmem:[%s4050_s14 + $0x528] sm:$0xff] }
 0x55f   :  { %1768 = vmatpush2.msra.mxu1 %v1323_v23  ;;  %1878 = vmatpush1.msra.mxu0 %v1213_v24  ;;  %v1458_v23 = vld [vmem:[%s4050_s14 + $0x8a8] sm:$0xff]  ;;  %v1340_v24 = vld [vmem:[%s4050_s14 + $0x4f8] sm:$0xff] }
 0x560   :  { %1769 = vmatprep.subr.mxu1 %v1317_v25  ;;  %1879 = vmatprep.subr.mxu0 %v1207_v26  ;;  %v1452_v25 = vld [vmem:[%s4050_s14 + $0x878] sm:$0xff]  ;;  %v1339_v26 = vld [vmem:[%s4050_s14 + $0x4f0] sm:$0xff] }
 0x561   :  { %1770 = vmatpush2.msra.mxu1 %v1316_v27  ;;  %1880 = vmatpush1.msra.mxu0 %v1206_v28  ;;  %v1451_v27 = vld [vmem:[%s4050_s14 + $0x870] sm:$0xff]  ;;  %v1333_v28 = vld [vmem:[%s4050_s14 + $0x4c0] sm:$0xff] }
 0x562   :  { %1771 = vmatprep.subr.mxu1 %v1310_v29  ;;  %1881 = vmatprep.subr.mxu0 %v1200_v30  ;;  %v1445_v29 = vld [vmem:[%s4050_s14 + $0x840] sm:$0xff]  ;;  %v1332_v30 = vld [vmem:[%s4050_s14 + $0x4b8] sm:$0xff] }
 0x563   :  { %1772 = vmatpush2.msra.mxu1 %v1309_v31  ;;  %1882 = vmatpush1.msra.mxu0 %v1199_v32  ;;  %v1444_v31 = vld [vmem:[%s4050_s14 + $0x838] sm:$0xff]  ;;  %v1326_v32 = vld [vmem:[%s4050_s14 + $0x488] sm:$0xff] }
 0x564   :  { %1773 = vmatprep.subr.mxu1 %v1303_v33  ;;  %1883 = vmatprep.subr.mxu0 %v1193_v34  ;;  %v1438_v33 = vld [vmem:[%s4050_s14 + $0x808] sm:$0xff]  ;;  %v1325_v34 = vld [vmem:[%s4050_s14 + $0x480] sm:$0xff] }
 0x565   :  { %1774 = vmatpush2.msra.mxu1 %v1302_v35  ;;  %1884 = vmatpush1.msra.mxu0 %v1192_v36  ;;  %v1437_v35 = vld [vmem:[%s4050_s14 + $0x800] sm:$0xff]  ;;  %v1319_v36 = vld [vmem:[%s4050_s14 + $0x450] sm:$0xff] }
 0x566   :  { %1775 = vmatprep.subr.mxu1 %v1296_v37  ;;  %1885 = vmatprep.subr.mxu0 %v1186_v38  ;;  %v1431_v37 = vld [vmem:[%s4050_s14 + $0x7d0] sm:$0xff]  ;;  %v1318_v38 = vld [vmem:[%s4050_s14 + $0x448] sm:$0xff] }
 0x567   :  { %1776 = vmatpush2.msra.mxu1 %v1295_v39  ;;  %1886 = vmatpush1.msra.mxu0 %v1185_v40  ;;  %v1430_v39 = vld [vmem:[%s4050_s14 + $0x7c8] sm:$0xff]  ;;  %v1312_v40 = vld [vmem:[%s4050_s14 + $0x418] sm:$0xff] }
 0x568   :  { %1778 = vmatmul.mubr.f32.vlgmr.msra.gmra.mxu1 %v3217_v12  ;;  %1887 = vmatprep.subr.mxu0 %v1403_v41  ;;  %v1424_v41 = vld [vmem:[%s4050_s14 + $0x798] sm:$0xff] }
 0x569   :  { %1926 = vmatprep.subr.mxu1 %v1515_v42  ;;  %1888 = vmatpush2.msra.mxu0 %v1402_v43  ;;  %v1311_v42 = vld [vmem:[%s4050_s14 + $0x410] sm:$0xff] }
 0x56a   :  { %1927 = vmatpush1.msra.mxu1 %v1514_v44  ;;  %2283 = vmatprep.mubr.msk.f32.mxu1 %vm106_vm0, %v3230_v18  ;;  %v1423_v43 = vld [vmem:[%s4050_s14 + $0x790] sm:$0xff]  ;;  %v1305_v44 = vld [vmem:[%s4050_s14 + $0x3e0] sm:$0xff] }
 0x56b   :  { %1889 = vmatprep.subr.mxu0 %v1396_v45  ;;  %1928 = vmatprep.subr.mxu1 %v1508_v47  ;;  %v1417_v45 = vld [vmem:[%s4050_s14 + $0x760] sm:$0xff]  ;;  %v1304_v47 = vld [vmem:[%s4050_s14 + $0x3d8] sm:$0xff] }
 0x56c   :  { %1890 = vmatpush2.msra.mxu0 %v1395_v48  ;;  %1929 = vmatpush1.msra.mxu1 %v1507_v49  ;;  %v1416_v48 = vld [vmem:[%s4050_s14 + $0x758] sm:$0xff]  ;;  %v1298_v49 = vld [vmem:[%s4050_s14 + $0x3a8] sm:$0xff] }
 0x56d   :  { %1891 = vmatprep.subr.mxu0 %v1389_v50  ;;  %1930 = vmatprep.subr.mxu1 %v1501_v51  ;;  %v1410_v50 = vld [vmem:[%s4050_s14 + $0x728] sm:$0xff]  ;;  %v1297_v51 = vld [vmem:[%s4050_s14 + $0x3a0] sm:$0xff] }
 0x56e   :  { %1892 = vmatpush2.msra.mxu0 %v1388_v52  ;;  %1931 = vmatpush1.msra.mxu1 %v1500_v53  ;;  %v1409_v52 = vld [vmem:[%s4050_s14 + $0x720] sm:$0xff] }
 0x56f   :  { %1893 = vmatprep.subr.mxu0 %v1382_v54  ;;  %1932 = vmatprep.subr.mxu1 %v1494_v55  ;;  %v1529_v53 = vld [vmem:[%s4050_s14 + $0xae0] sm:$0xff]  ;;  %v1528_v54 = vld [vmem:[%s4050_s14 + $0xad8] sm:$0xff] }
 0x570   :  { %1894 = vmatpush2.msra.mxu0 %v1381_v56  ;;  %1933 = vmatpush1.msra.mxu1 %v1493_v59  ;;  %v1516_v55 = vld [vmem:[%s4050_s14 + $0xa78] sm:$0xff]  ;;  %v1522_v56 = vld [vmem:[%s4050_s14 + $0xaa8] sm:$0xff]  ;;  %v1521_v59 = vld [vmem:[%s4050_s14 + $0xaa0] sm:$0xff] }
 0x571   :  { %1895 = vmatprep.subr.mxu0 %v1375_v62  ;;  %1934 = vmatprep.subr.mxu1 %v1487_v63  ;;  %v1509_v62 = vld [vmem:[%s4050_s14 + $0xa40] sm:$0xff]  ;;  %v1404_v63 = vld [vmem:[%s4050_s14 + $0x6f8] sm:$0xff] }
 0x572   :  { %1896 = vmatpush2.msra.mxu0 %v1374_v1  ;;  %1935 = vmatpush1.msra.mxu1 %v1486_v4  ;;  %v1292_v1 = vld [vmem:[%s4050_s14 + $0x378] sm:$0xff]  ;;  %v1502_v4 = vld [vmem:[%s4050_s14 + $0xa08] sm:$0xff] }
 0x573   :  { %1897 = vmatprep.subr.mxu0 %v1368_v5  ;;  %1936 = vmatprep.subr.mxu1 %v1480_v6  ;;  %v1285_v5 = vld [vmem:[%s4050_s14 + $0x340] sm:$0xff]  ;;  %v1495_v6 = vld [vmem:[%s4050_s14 + $0x9d0] sm:$0xff] }
 0x574   :  { %1898 = vmatpush2.msra.mxu0 %v1367_v7  ;;  %1937 = vmatpush1.msra.mxu1 %v1479_v8  ;;  %v1390_v7 = vld [vmem:[%s4050_s14 + $0x688] sm:$0xff] }
 0x575   :  { %1899 = vmatprep.subr.mxu0 %v1361_v9  ;;  %1938 = vmatprep.subr.mxu1 %v1473_v10  ;;  %v1278_v8 = vld [vmem:[%s4050_s14 + $0x308] sm:$0xff]  ;;  %v1488_v9 = vld [vmem:[%s4050_s14 + $0x998] sm:$0xff]  ;;  %v1271_v10 = vld [vmem:[%s4050_s14 + $0x2d0] sm:$0xff] }
 0x576   :  { %1900 = vmatpush2.msra.mxu0 %v1360_v46  ;;  %1939 = vmatpush1.msra.mxu1 %v1472_v13  ;;  %v1481_v46 = vld [vmem:[%s4050_s14 + $0x960] sm:$0xff]  ;;  %v1376_v13 = vld [vmem:[%s4050_s14 + $0x618] sm:$0xff] }
 0x577   :  { %1901 = vmatprep.subr.mxu0 %v1354_v14  ;;  %1940 = vmatprep.subr.mxu1 %v1466_v15  ;;  %v1264_v14 = vld [vmem:[%s4050_s14 + $0x298] sm:$0xff]  ;;  %v1474_v15 = vld [vmem:[%s4050_s14 + $0x928] sm:$0xff] }
 0x578   :  { %1902 = vmatpush2.msra.mxu0 %v1353_v16  ;;  %1941 = vmatpush1.msra.mxu1 %v1465_v17  ;;  %v1369_v16 = vld [vmem:[%s4050_s14 + $0x5e0] sm:$0xff] }
 0x579   :  { %1903 = vmatprep.subr.mxu0 %v1347_v19  ;;  %1942 = vmatprep.subr.mxu1 %v1459_v20  ;;  %v1257_v17 = vld [vmem:[%s4050_s14 + $0x260] sm:$0xff]  ;;  %v1467_v19 = vld [vmem:[%s4050_s14 + $0x8f0] sm:$0xff]  ;;  %v1362_v20 = vld [vmem:[%s4050_s14 + $0x5a8] sm:$0xff] }
 0x57a   :  { %1904 = vmatpush2.msra.mxu0 %v1346_v22  ;;  %1943 = vmatpush1.msra.mxu1 %v1458_v23  ;;  %v1250_v22 = vld [vmem:[%s4050_s14 + $0x228] sm:$0xff]  ;;  %v1460_v23 = vld [vmem:[%s4050_s14 + $0x8b8] sm:$0xff] }
 0x57b   :  { %1905 = vmatprep.subr.mxu0 %v1340_v24  ;;  %1944 = vmatprep.subr.mxu1 %v1452_v25  ;;  %v1355_v24 = vld [vmem:[%s4050_s14 + $0x570] sm:$0xff] }
 0x57c   :  { %1906 = vmatpush2.msra.mxu0 %v1339_v26  ;;  %1945 = vmatpush1.msra.mxu1 %v1451_v27  ;;  %v1243_v25 = vld [vmem:[%s4050_s14 + $0x1f0] sm:$0xff]  ;;  %v1453_v26 = vld [vmem:[%s4050_s14 + $0x880] sm:$0xff]  ;;  %v1348_v27 = vld [vmem:[%s4050_s14 + $0x538] sm:$0xff] }
 0x57d   :  { %1907 = vmatprep.subr.mxu0 %v1333_v28  ;;  %1946 = vmatprep.subr.mxu1 %v1445_v29  ;;  %v1236_v28 = vld [vmem:[%s4050_s14 + $0x1b8] sm:$0xff]  ;;  %v1446_v29 = vld [vmem:[%s4050_s14 + $0x848] sm:$0xff] }
 0x57e   :  { %1908 = vmatpush2.msra.mxu0 %v1332_v30  ;;  %1947 = vmatpush1.msra.mxu1 %v1444_v31  ;;  %v1341_v30 = vld [vmem:[%s4050_s14 + $0x500] sm:$0xff] }
 0x57f   :  { %1909 = vmatprep.subr.mxu0 %v1326_v32  ;;  %1948 = vmatprep.subr.mxu1 %v1438_v33  ;;  %v1229_v31 = vld [vmem:[%s4050_s14 + $0x180] sm:$0xff]  ;;  %v1439_v32 = vld [vmem:[%s4050_s14 + $0x810] sm:$0xff]  ;;  %v1334_v33 = vld [vmem:[%s4050_s14 + $0x4c8] sm:$0xff] }
 0x580   :  { %1910 = vmatpush2.msra.mxu0 %v1325_v34  ;;  %1949 = vmatpush1.msra.mxu1 %v1437_v35  ;;  %v1222_v34 = vld [vmem:[%s4050_s14 + $0x148] sm:$0xff]  ;;  %v1432_v35 = vld [vmem:[%s4050_s14 + $0x7d8] sm:$0xff] }
 0x581   :  { %1911 = vmatprep.subr.mxu0 %v1319_v36  ;;  %1950 = vmatprep.subr.mxu1 %v1431_v37  ;;  %v1327_v36 = vld [vmem:[%s4050_s14 + $0x490] sm:$0xff] }
 0x582   :  { %1912 = vmatpush2.msra.mxu0 %v1318_v38  ;;  %1951 = vmatpush1.msra.mxu1 %v1430_v39  ;;  %v1215_v37 = vld [vmem:[%s4050_s14 + $0x110] sm:$0xff]  ;;  %v1425_v38 = vld [vmem:[%s4050_s14 + $0x7a0] sm:$0xff]  ;;  %v1320_v39 = vld [vmem:[%s4050_s14 + $0x458] sm:$0xff] }
 0x583   :  { %1913 = vmatprep.subr.mxu0 %v1312_v40  ;;  %1952 = vmatprep.subr.mxu1 %v1424_v41  ;;  %v1208_v40 = vld [vmem:[%s4050_s14 + $0xd8] sm:$0xff]  ;;  %v1418_v41 = vld [vmem:[%s4050_s14 + $0x768] sm:$0xff] }
 0x584   :  { %1914 = vmatpush2.msra.mxu0 %v1311_v42  ;;  %1953 = vmatpush1.msra.mxu1 %v1423_v43  ;;  %v1313_v42 = vld [vmem:[%s4050_s14 + $0x420] sm:$0xff] }
 0x585   :  { %1915 = vmatprep.subr.mxu0 %v1305_v44  ;;  %1954 = vmatprep.subr.mxu1 %v1417_v45  ;;  %v1201_v43 = vld [vmem:[%s4050_s14 + $0xa0] sm:$0xff]  ;;  %v1411_v44 = vld [vmem:[%s4050_s14 + $0x730] sm:$0xff]  ;;  %v1306_v45 = vld [vmem:[%s4050_s14 + $0x3e8] sm:$0xff] }
 0x586   :  { %1916 = vmatpush2.msra.mxu0 %v1304_v47  ;;  %1955 = vmatpush1.msra.mxu1 %v1416_v48  ;;  %v1194_v47 = vld [vmem:[%s4050_s14 + $0x68] sm:$0xff] }
 0x587   :  { %1917 = vmatprep.subr.mxu0 %v1298_v49  ;;  %1956 = vmatprep.subr.mxu1 %v1410_v50  ;;  %v1530_v48 = vld [vmem:[%s4050_s14 + $0xae8] sm:$0xff]  ;;  %v1299_v49 = vld [vmem:[%s4050_s14 + $0x3b0] sm:$0xff] }
 0x588   :  { %1918 = vmatpush2.msra.mxu0 %v1297_v51  ;;  %1957 = vmatpush1.msra.mxu1 %v1409_v52  ;;  %v1187_v50 = vld [vmem:[%s4050_s14 + $0x30] sm:$0xff] }
 0x589   :  { %1920 = vmatmul.mubr.f32.vlgmr.msra.gmra.mxu0 %v3217_v12  ;;  %1986 = vmatprep.subr.mxu1 %v1529_v53  ;;  %v1523_v51 = vld [vmem:[%s4050_s14 + $0xab0] sm:$0xff]  ;;  %v1531_v53 = vld [vmem:[%s4054_s15] sm:$0x7f] }
 0x58a   :  { %2067 = vmatprep.subr.mxu0 %v2472_v0  ;;  %1987 = vmatpush2.msra.mxu1 %v1528_v54 }
 0x58b   :  { %2068 = vmatpush1.msra.mxu0 %v1516_v55  ;;  %2284 = vmatprep.mubr.msk.f32.mxu0 %vm106_vm0, %v3230_v18  ;;  %v1397_v18 = vld [vmem:[%s4050_s14 + $0x6c0] sm:$0xff]  ;;  %v1540_v55 = vrot.slane %v1531_v53, %v1009_v60  ;;  %vm2207_vm0 = vcmask 162816  }
 0x58c   :  { %1988 = vmatprep.subr.mxu1 %v1522_v56  ;;  %2069 = vmatprep.subr.mxu0 %v2472_v0 }
 0x58d   :  { %1989 = vmatpush2.msra.mxu1 %v1521_v59  ;;  %2070 = vmatpush1.msra.mxu0 %v1509_v62  ;;  %v1536_v59 = vrot.slane %v1531_v53, %v1005_v58 }
 0x58e   :  { %1991 = vmatmul.mubr.f32.vlgmr.msra.gmra.mxu1 %v3238_v21  ;;  %2324 = vmatprep.subr.mxu1 %v1404_v63 }
 0x58f   :  { %2071 = vmatprep.subr.mxu0 %v2472_v0  ;;  %2325 = vmatpush3.msra.mxu1 %v1292_v1  ;;  %v1548_v1 = vrot.slane %v1531_v53, %v1017_v3 }
 0x590   :  { %2061 = vmatprep.mubr.f32.mxu1 %v3215_v11  ;;  %2072 = vmatpush1.msra.mxu0 %v1502_v4  ;;  %v1383_v11 = vld [vmem:[%s4050_s14 + $0x650] sm:$0xff] }
 0x591   :  { %2326 = vmatprep.subr.mxu1 %v1397_v18  ;;  %2073 = vmatprep.subr.mxu0 %v2472_v0 }
 0x592   :  { %2327 = vmatpush3.msra.mxu1 %v1285_v5  ;;  %2074 = vmatpush1.msra.mxu0 %v1495_v6 }
 0x593   :  { %2328 = vmatprep.subr.mxu1 %v1390_v7  ;;  %2075 = vmatprep.subr.mxu0 %v2472_v0 }
 0x594   :  { %2329 = vmatpush3.msra.mxu1 %v1278_v8  ;;  %2076 = vmatpush1.msra.mxu0 %v1488_v9 }
 0x595   :  { %2330 = vmatprep.subr.mxu1 %v1383_v11  ;;  %2077 = vmatprep.subr.mxu0 %v2472_v0  ;;  %v2477_v11 = vmov 1983009808  }
 0x596   :  { %2331 = vmatpush3.msra.mxu1 %v1271_v10  ;;  %2078 = vmatpush1.msra.mxu0 %v1481_v46 }
 0x597   :  { %2332 = vmatprep.subr.mxu1 %v1376_v13  ;;  %2079 = vmatprep.subr.mxu0 %v2472_v0 }
 0x598   :  { %2333 = vmatpush3.msra.mxu1 %v1264_v14  ;;  %2080 = vmatpush1.msra.mxu0 %v1474_v15 }
 0x599   :  { %2334 = vmatprep.subr.mxu1 %v1369_v16  ;;  %2081 = vmatprep.subr.mxu0 %v2472_v0 }
 0x59a   :  { %2335 = vmatpush3.msra.mxu1 %v1257_v17  ;;  %2082 = vmatpush1.msra.mxu0 %v1467_v19  ;;  %v2272_v19 = vld [vmem:[%s4055_s11] ss:$0 sm:$0xff] }
 0x59b   :  { %2336 = vmatprep.subr.mxu1 %v1362_v20  ;;  %2083 = vmatprep.subr.mxu0 %v2472_v0 }
 0x59c   :  { %2337 = vmatpush3.msra.mxu1 %v1250_v22  ;;  %2084 = vmatpush1.msra.mxu0 %v1460_v23  ;;  %v990_v23 = vadd.f32 %v2272_v19, %v3203_v61  ;;  %v1559_v61 = vsub.s32 6, %v3196_v57 }
 0x59d   :  { %2338 = vmatprep.subr.mxu1 %v1355_v24  ;;  %2085 = vmatprep.subr.mxu0 %v2472_v0 }
 0x59e   :  { %2339 = vmatpush3.msra.mxu1 %v1243_v25  ;;  %2086 = vmatpush1.msra.mxu0 %v1453_v26  ;;  %v1555_v26 = vsub.s32 5, %v3196_v57 }
 0x59f   :  { %2340 = vmatprep.subr.mxu1 %v1348_v27  ;;  %2087 = vmatprep.subr.mxu0 %v2472_v0 }
 0x5a0   :  { %2341 = vmatpush3.msra.mxu1 %v1236_v28  ;;  %2088 = vmatpush1.msra.mxu0 %v1446_v29  ;;  %v1551_v28 = vsub.s32 4, %v3196_v57 }
 0x5a1   :  { %2342 = vmatprep.subr.mxu1 %v1341_v30  ;;  %2089 = vmatprep.subr.mxu0 %v2472_v0  ;;  %v1556_v30 = vrot.slane %v1531_v53, %v1555_v26 }
 0x5a2   :  { %2343 = vmatpush3.msra.mxu1 %v1229_v31  ;;  %2090 = vmatpush1.msra.mxu0 %v1439_v32  ;;  %v1552_v32 = vrot.slane %v1531_v53, %v1551_v28 }
 0x5a3   :  { %2344 = vmatprep.subr.mxu1 %v1334_v33  ;;  %2091 = vmatprep.subr.mxu0 %v2472_v0 }
 0x5a4   :  { %2345 = vmatpush3.msra.mxu1 %v1222_v34  ;;  %2092 = vmatpush1.msra.mxu0 %v1432_v35 }
 0x5a5   :  { %2346 = vmatprep.subr.mxu1 %v1327_v36  ;;  %2093 = vmatprep.subr.mxu0 %v2472_v0 }
 0x5a6   :  { %2347 = vmatpush3.msra.mxu1 %v1215_v37  ;;  %2094 = vmatpush1.msra.mxu0 %v1425_v38 }
 0x5a7   :  { %2348 = vmatprep.subr.mxu1 %v1320_v39  ;;  %2095 = vmatprep.subr.mxu0 %v2472_v0 }
 0x5a8   :  { %2349 = vmatpush3.msra.mxu1 %v1208_v40  ;;  %2096 = vmatpush1.msra.mxu0 %v1418_v41  ;;  %v1560_v40 = vrot.slane %v1531_v53, %v1559_v61 }
 0x5a9   :  { %2350 = vmatprep.subr.mxu1 %v1313_v42  ;;  %2097 = vmatprep.subr.mxu0 %v2472_v0 }
 0x5aa   :  { %2351 = vmatpush3.msra.mxu1 %v1201_v43  ;;  %2098 = vmatpush1.msra.mxu0 %v1411_v44 }
 0x5ab   :  { %2352 = vmatprep.subr.mxu1 %v1306_v45  ;;  %2127 = vmatprep.subr.mxu0 %v2472_v0 }
 0x5ac   :  { %2353 = vmatpush3.msra.mxu1 %v1194_v47  ;;  %2128 = vmatpush2.msra.mxu0 %v1530_v48 }
 0x5ad   :  { %2354 = vmatprep.subr.mxu1 %v1299_v49  ;;  %2129 = vmatprep.subr.mxu0 %v2472_v0 }
 0x5ae   :  { %2355 = vmatpush3.msra.mxu1 %v1187_v50  ;;  %2130 = vmatpush2.msra.mxu0 %v1523_v51 }
 0x5af   :  { %2062 = vmatmul.mubr.f32.vlgmr.msra.gmra.mxu1 %v3217_v12  ;;  %2132 = vmatmul.mubr.f32.vlgmr.msra.gmra.mxu0 %v3238_v21  ;;  %v1544_v12 = vrot.slane %v1531_v53, %v1013_v2  ;;  %v2150_v2 = vunpack.c.l.s4 %v2477_v11 }
 0x5b1   :  { %v2151_v46 = vunpack.c.0.s8 %v2150_v2 }
 0x5b3   :  { %v2154_v16 = vsub.s32 %v2151_v46, %v3196_v57 }
 0x5b5   :  { %v2155_v25 = vrot.slane %v990_v23, %v2154_v16 }
 0x5e2   :  { %v1637_v52 = vpop.f32.mrf.mxu0 }
 0x5e3   :  { %v1638_v63 = vadd.f32 %v1637_v52, %v1536_v59 }
 0x5e4   :  { %v1639_v56 = vpop.f32.mrf.mxu0 }
 0x5e5   :  { %v1640_v62 = vadd.f32 %v1639_v56, %v1540_v55 }
 0x5e7   :  { %v1708_v54 = vpop.f32.mrf.mxu1 }
 0x5e8   :  { %v1709_v5 = vadd.f32 %v1708_v54, %v1638_v63 }
 0x5e9   :  { %v1710_v0 = vpop.f32.mrf.mxu1 }
 0x5ea   :  { %v1711_v21 = vadd.f32 %v1710_v0, %v1640_v62 }
 0x5ec   :  { %2458 = vtanh.f32 %v1711_v21 }
 0x5ed   :  { %2460 = vtanh.f32 %v1709_v5 }
 0x5f9   :  { %v2459_v10 = vpop.eup %2458 }
 0x5fa   :  { %v2461_v13 = vpop.eup %2460 }
 0x5fb   :  { %v2168_v3 = vcombine.low %v2461_v13, %v2459_v10 }
 0x5fd   :  { %v2176_v20 = vrot.slane %v2168_v3, %v2154_v16 }
 0x607   :  { %v1850_v4 = vpop.f32.mrf.mxu0 }
 0x609   :  { %v1852_v9 = vpop.f32.mrf.mxu0 }
 0x628   :  { %v1779_v18 = vpop.f32.mrf.mxu1 }
 0x629   :  { %v1780_v6 = vadd.f32 %v1779_v18, %v1544_v12 }
 0x62a   :  { %v1781_v7 = vpop.f32.mrf.mxu1 }
 0x62b   :  { %v1851_v60 = vadd.f32 %v1850_v4, %v1780_v6  ;;  %v1782_v8 = vadd.f32 %v1781_v7, %v1548_v1 }
 0x62d   :  { %v1853_v58 = vadd.f32 %v1852_v9, %v1782_v8  ;;  %2462 = vtanh.f32 %v1851_v60 }
 0x62f   :  { %2464 = vtanh.f32 %v1853_v58 }
 0x63a   :  { %v2463_v14 = vpop.eup %2462 }
 0x63c   :  { %v2465_v15 = vpop.eup %2464 }
 0x63d   :  { %v2169_v17 = vcombine.low %v2463_v14, %v2465_v15 }
 0x63f   :  { %v2183_v22 = vrot.slane %v2169_v17, %v2154_v16 }
 0x641   :  { %v2184_v24 = vcombine.low %v2176_v20, %v2183_v22 }
 0x643   :  { %2201 = vrot.lane.b32.xlu1 %v2184_v24, %s2478_s24 }
 0x647   :  { %2156 = vrot.lane.b32.xlu1 %v2155_v25, %s2479_s26 }
 0x649   :  { %v1921_v27 = vpop.f32.mrf.mxu0 }
 0x64a   :  { %v1922_v35 = vadd.f32 %v1921_v27, %v1552_v32 }
 0x64b   :  { %v1923_v31 = vpop.f32.mrf.mxu0 }
 0x64c   :  { %v1924_v34 = vadd.f32 %v1923_v31, %v1556_v30 }
 0x64e   :  { %v1992_v29 = vpop.f32.mrf.mxu1 }
 0x64f   :  { %v1993_v39 = vadd.f32 %v1992_v29, %v1922_v35 }
 0x650   :  { %v1994_v33 = vpop.f32.mrf.mxu1 }
 0x651   :  { %v1995_v36 = vadd.f32 %v1994_v33, %v1924_v34 }
 0x653   :  { %2466 = vtanh.f32 %v1995_v36 }
 0x654   :  { %2468 = vtanh.f32 %v1993_v39 }
 0x660   :  { %v2467_v47 = vpop.eup %2466 }
 0x661   :  { %v2469_v48 = vpop.eup %2468 }
 0x662   :  { %v2185_v49 = vcombine.low %v2469_v48, %v2467_v47 }
 0x664   :  { %v2192_v51 = vrot.slane %v2185_v49, %v2154_v16 }
 0x66f   :  { %v2356_v37 = vpop.f32.mrf.mxu1  ;;  %v2133_v38 = vpop.f32.mrf.mxu0 }
 0x671   :  { %v2357_v41 = vpop.f32.mrf.mxu1  ;;  %v2135_v42 = vpop.f32.mrf.mxu0 }
 0x672   :  { %v2358_v43 = vadd.f32 %v2357_v41, %v2356_v37 }
 0x674   :  { %v2064_v44 = vadd.f32 %v2358_v43, %v1560_v40 }
 0x676   :  { %v2134_v45 = vadd.f32 %v2133_v38, %v2064_v44 }
 0x678   :  { %2470 = vtanh.f32 %v2134_v45 }
 0x685   :  { %v2471_v50 = vpop.eup %2470 }
 0x686   :  { %v2199_v57 = vrot.slane %v2471_v50, %v2154_v16 }
 0x688   :  { %v2200_v52 = vcombine.low %v2192_v51, %v2199_v57 }
 0x68a   :  { %2203 = vrot.lane.b32.xlu0 %v2200_v52, %s2478_s24 }
 0x6b5   :  { %v2202_v53 = vpop.permute.xlu1 %2201 }
 0x6b6   :  { %v2205_v54 = vrot.slane %v2202_v53, 6 }
 0x6b8   :  { %v2208_v56 = vsel %vm2207_vm0, %v2205_v54, %v2202_v53 }
 0x6b9   :  { %v2157_v55 = vpop.permute.xlu1 %2156 }
 0x6ba   :  { %2160 = vst.msk [vmem:[%s4047_s16] sm:$0x3] %vm2159_vm1, %v2157_v55 }
 0x6bb   :  { %2220 = vst.msk [vmem:[%s4047_s16] sm:$0xff] %vm2219_vm2, %v2208_v56 }
 0x6fc   :  { %v2204_v59 = vpop.permute.xlu0 %2203 }
 0x6fd   :  { %v2206_v0 = vrot.slane %v2204_v59, 6 }
 0x6ff   :  { %v2209_v62 = vsel %vm833_vm6, %v2205_v54, %v2206_v0 }
 0x700   :  { %v2210_v12 = vsel %vm2207_vm0, %v2209_v62, %v2204_v59 }
 0x701   :  { %2224 = vst.msk [vmem:[%s4047_s16 + $0x8] sm:$0x3f] %vm2223_vm5, %v2210_v12 }

</bundles_post_ra>
